<compile_context>
chip_gen: v5e
topology: v5e:2x2
jax: 0.10.0
libtpu: 0.0.40
codegen_flags: <defaults>
</compile_context>

<pallas_src>
import functools

import jax
import jax.numpy as jnp
from jax.experimental import pallas as pl
from jax.experimental.pallas import tpu as pltpu


def attention_kernel(x_ref, wqkv_ref, wproj_ref, bproj_ref, *rest,
                     num_heads, scale, compute_dtype, approx_recip, return_attn):
    if return_attn:
        out_ref, attn_ref, qkv_s, o_s = rest
    else:
        out_ref, qkv_s, o_s = rest
        attn_ref = None

    TB, N, C = x_ref.shape
    Dh = C // num_heads
    M = TB * N

    # QKV projection on the whole (TB*N, C) slab: one big-M MXU matmul.
    # Weights already arrive in compute_dtype (cast in the wrapper).
    x = x_ref[...].reshape(M, C).astype(compute_dtype)
    qkv = jnp.dot(x, wqkv_ref[...], preferred_element_type=jnp.float32)  # (M, 3C) f32

    # Stage qkv into VMEM scratch (compute dtype) so the big value is not live
    # across the unrolled head loop (ref slices instead of vreg spills).
    qkv_s[...] = qkv.astype(compute_dtype)

    for h in range(num_heads):
        sl = slice(h * Dh, (h + 1) * Dh)
        # Apply the softmax scale to q (NxDh) instead of the NxN logits.
        qh = qkv_s[:, sl].reshape(TB, N, Dh) * scale
        kh = qkv_s[:, C + h * Dh:C + (h + 1) * Dh].reshape(TB, N, Dh)
        vh = qkv_s[:, 2 * C + h * Dh:2 * C + (h + 1) * Dh].reshape(TB, N, Dh)

        # Batched over the TB batch rows of this tile (tokens never mix across
        # batch elements).
        logits = jnp.einsum('bqd,bkd->bqk', qh, kh,
                            preferred_element_type=jnp.float32)          # (TB,N,N) f32
        m = jnp.max(logits, axis=-1, keepdims=True)
        p = jnp.exp(logits - m)
        denom = jnp.sum(p, axis=-1, keepdims=True)
        attn = p * pl.reciprocal(denom, approx=approx_recip)             # softmax(-1)
        if attn_ref is not None:
            attn_ref[:, h] = attn.astype(attn_ref.dtype)

        oh = jnp.einsum('bqk,bkd->bqd', attn.astype(compute_dtype), vh,
                        preferred_element_type=jnp.float32)              # (TB,N,Dh)
        o_s[:, sl] = oh.reshape(M, Dh).astype(o_s.dtype)

    # Output projection from the VMEM scratch slab (big-M matmul) + f32 bias.
    y = jnp.dot(o_s[...], wproj_ref[...],
                preferred_element_type=jnp.float32) + bproj_ref[...]
    out_ref[...] = y.reshape(TB, N, C).astype(out_ref.dtype)


def _auto_vmem_limit():
    """Generation-aware scoped-VMEM request (None -> leave compiler default)."""
    try:
        info = pltpu.get_tpu_info()
        cap = getattr(info, "vmem_capacity_bytes", None)
        if not cap:
            return None
        # ~3/4 of physical VMEM, capped: v7x (64 MiB) -> 48 MiB, v5e/v6e -> 96 MiB.
        return min(int(cap) * 3 // 4, 96 * 1024 * 1024)
    except Exception:
        return None


def _pick_batch_tile(B, N, C, num_heads, *, x_bytes, out_bytes, attn_bytes,
                     compute_bytes, return_attn, budget_bytes, target_rows=256):
    """Batch rows per grid step: fill the MXU M-dim, keep >=2 steps when B>=2
    (both v7x TensorCores get work), and stay inside the VMEM budget."""
    def step_bytes(tb):
        m = tb * N
        f = 2 * m * C * x_bytes                       # x block (double-buffered)
        f += 2 * m * C * out_bytes                    # out block (double-buffered)
        if return_attn:
            f += 2 * tb * num_heads * N * N * attn_bytes
        f += m * 3 * C * compute_bytes                # qkv scratch
        f += m * C * compute_bytes                    # head-output scratch
        f += 3 * tb * N * N * 4                       # per-head f32 logits/exp temps
        f += 2 * m * 3 * C * 4                        # f32 qkv matmul result + misc
        return f

    weight_bytes = (C * 3 * C + C * C) * compute_bytes + C * 4
    budget = max(budget_bytes - weight_bytes, 1)

    tb = max(1, min(B, pl.cdiv(target_rows, N)))
    if B >= 2:
        tb = min(tb, max(1, B // 2))
    while tb > 1 and (B % tb or step_bytes(tb) > budget):
        tb -= 1
    return max(tb, 1)


def attention_pallas(x, w_qkv, w_proj, b_proj, num_heads, *,
                     compute_dtype=jnp.bfloat16, return_attn=True,
                     attn_dtype=None, batch_tile=None, vmem_limit_bytes="auto"):
    B, N, C = x.shape
    assert C % num_heads == 0
    Dh = C // num_heads
    scale = Dh ** -0.5

    if vmem_limit_bytes == "auto":
        vmem_limit_bytes = _auto_vmem_limit()
    plan_budget = vmem_limit_bytes if vmem_limit_bytes else 32 * 1024 * 1024

    # Weights enter the kernel already in compute dtype (halves HBM->VMEM traffic
    # for bf16); bias stays f32 since it is added to the f32 accumulator.
    w_qkv = w_qkv.astype(compute_dtype)
    w_proj = w_proj.astype(compute_dtype)
    b_proj = jnp.asarray(b_proj, jnp.float32).reshape(1, C)

    if attn_dtype is None:
        attn_dtype = x.dtype
    compute_bytes = jnp.dtype(compute_dtype).itemsize

    if batch_tile is None:
        TB = _pick_batch_tile(
            B, N, C, num_heads,
            x_bytes=jnp.dtype(x.dtype).itemsize,
            out_bytes=jnp.dtype(x.dtype).itemsize,
            attn_bytes=jnp.dtype(attn_dtype).itemsize,
            compute_bytes=compute_bytes, return_attn=return_attn,
            budget_bytes=int(plan_budget * 0.7))
    else:
        TB = batch_tile
    assert B % TB == 0, "batch tile must divide B"

    approx_recip = jnp.dtype(compute_dtype) != jnp.dtype(jnp.float32)
    kernel = functools.partial(
        attention_kernel, num_heads=num_heads, scale=scale,
        compute_dtype=compute_dtype, approx_recip=approx_recip,
        return_attn=return_attn)

    def run(single_buffer_weights):
        # Grid-invariant operands: request a single VMEM buffer (no point
        # double-buffering a constant index_map -> frees weight-sized VMEM).
        wkw = dict(pipeline_mode=pl.Buffered(1)) if single_buffer_weights else {}
        in_specs = [
            pl.BlockSpec((TB, N, C), lambda b: (b, 0, 0)),           # x: TB batch rows
            pl.BlockSpec((C, 3 * C), lambda b: (0, 0), **wkw),       # Wqkv (resident)
            pl.BlockSpec((C, C), lambda b: (0, 0), **wkw),           # Wproj (resident)
            pl.BlockSpec((1, C), lambda b: (0, 0), **wkw),           # bproj
        ]
        out_shape = [jax.ShapeDtypeStruct((B, N, C), x.dtype)]
        out_specs = [pl.BlockSpec((TB, N, C), lambda b: (b, 0, 0))]
        if return_attn:
            out_shape.append(jax.ShapeDtypeStruct((B, num_heads, N, N), attn_dtype))
            out_specs.append(
                pl.BlockSpec((TB, num_heads, N, N), lambda b: (b, 0, 0, 0)))
        return pl.pallas_call(
            kernel,
            out_shape=out_shape,
            grid_spec=pltpu.PrefetchScalarGridSpec(
                num_scalar_prefetch=0,
                grid=(B // TB,),
                in_specs=in_specs,
                out_specs=out_specs,
                scratch_shapes=[
                    pltpu.VMEM((TB * N, 3 * C), compute_dtype),   # staged qkv
                    pltpu.VMEM((TB * N, C), compute_dtype),       # head-output slab
                ],
            ),
            compiler_params=pltpu.CompilerParams(
                dimension_semantics=("parallel",),
                vmem_limit_bytes=vmem_limit_bytes,
            ),
        )(x, w_qkv, w_proj, b_proj)

    try:
        res = run(single_buffer_weights=True)
    except Exception:
        # This jax build rejects pipeline_mode on top-level BlockSpecs; fall
        # back to default double-buffering for the weight operands.
        res = run(single_buffer_weights=False)

    if return_attn:
        return res[0], res[1]
    return res[0]


def attention_ref(x, w_qkv, w_proj, b_proj, num_heads):
    """Pure-JAX reference mirroring the PyTorch forward exactly."""
    B, N, C = x.shape
    Dh = C // num_heads
    scale = Dh ** -0.5
    qkv = (x @ w_qkv).reshape(B, N, 3, num_heads, Dh).transpose(2, 0, 3, 1, 4)
    q, k, v = qkv[0], qkv[1], qkv[2]
    attn = jnp.einsum('bhqd,bhkd->bhqk', q, k) * scale
    attn = jax.nn.softmax(attn, axis=-1)
    o = jnp.einsum('bhqk,bhkd->bhqd', attn, v).transpose(0, 2, 1, 3).reshape(B, N, C)
    return o @ w_proj + b_proj.reshape(-1), attn


if __name__ == "__main__":
    B, N, C = 2, 8, 32
    num_heads = 4  # head_dim = 8

    key = jax.random.PRNGKey(0)
    kx, k1, k2, k3 = jax.random.split(key, 4)
    x = jax.random.normal(kx, (B, N, C), dtype=jnp.float32)
    # Deterministic synthetic parameters, stored (in, out) == W.T of nn.Linear.
    w_qkv = jax.random.normal(k1, (C, 3 * C), dtype=jnp.float32) * 0.05  # qkv_bias=False
    w_proj = jax.random.normal(k2, (C, C), dtype=jnp.float32) * 0.05
    b_proj = jax.random.normal(k3, (C,), dtype=jnp.float32) * 0.05

    out_r, attn_r = attention_ref(x, w_qkv, w_proj, b_proj, num_heads)

    # 1) f32 compute path: tight tolerance vs the PyTorch-equivalent reference.
    out, attn = attention_pallas(x, w_qkv, w_proj, b_proj, num_heads,
                                 compute_dtype=jnp.float32)
    jax.block_until_ready(out)
    jax.block_until_ready(attn)
    assert jnp.allclose(out, out_r, atol=2e-5, rtol=2e-5), "f32 output mismatch"
    assert jnp.allclose(attn, attn_r, atol=2e-5, rtol=2e-5), "f32 attn mismatch"

    # 2) Default bf16 compute path (MXU-fast): loose tolerance, f32 accumulation.
    out_bf, attn_bf = attention_pallas(x, w_qkv, w_proj, b_proj, num_heads)
    jax.block_until_ready(out_bf)
    jax.block_until_ready(attn_bf)
    assert jnp.allclose(out_bf.astype(jnp.float32), out_r, atol=5e-2, rtol=5e-2), \
        "bf16 output mismatch"
    assert jnp.allclose(attn_bf.astype(jnp.float32), attn_r, atol=2e-2, rtol=2e-2), \
        "bf16 attn mismatch"

    # 3) Perf mode: skip the (B,H,N,N) attention-probability writeback entirely.
    out_only = attention_pallas(x, w_qkv, w_proj, b_proj, num_heads,
                                return_attn=False)
    jax.block_until_ready(out_only)
    assert jnp.allclose(out_only.astype(jnp.float32), out_r, atol=5e-2, rtol=5e-2), \
        "no-attn output mismatch"

    print("KERNEL_OK")
</pallas_src>

<mosaic_0001>
module attributes {stable_mosaic.version = 11 : i64} {
  func.func @attention_kernel(%arg0: i32, %arg1: memref<1x8x32xf32, #tpu.memory_space<vmem>>, %arg2: memref<32x96xf32, #tpu.memory_space<vmem>>, %arg3: memref<32x32xf32, #tpu.memory_space<vmem>>, %arg4: memref<1x32xf32, #tpu.memory_space<vmem>>, %arg5: memref<1x8x32xf32, #tpu.memory_space<vmem>>, %arg6: memref<1x4x8x8xf32, #tpu.memory_space<vmem>>, %arg7: memref<8x96xf32, #tpu.memory_space<vmem>>, %arg8: memref<8x32xf32, #tpu.memory_space<vmem>>) attributes {dimension_semantics = [#tpu.dimension_semantics<parallel>], iteration_bounds = array<i64: 2>, scalar_prefetch = 0 : i64, scratch_operands = 2 : i64, tpu.core_type = #tpu.core_type<tc>, window_params = [{transform_indices = @transform_0, window_bounds = array<i64: 1, 8, 32>}, {pipeline_mode = #tpu.pipeline_mode<synchronous>, transform_indices = @transform_1, window_bounds = array<i64: 32, 96>}, {pipeline_mode = #tpu.pipeline_mode<synchronous>, transform_indices = @transform_2, window_bounds = array<i64: 32, 32>}, {pipeline_mode = #tpu.pipeline_mode<synchronous>, transform_indices = @transform_3, window_bounds = array<i64: 1, 32>}, {transform_indices = @transform_4, window_bounds = array<i64: 1, 8, 32>}, {transform_indices = @transform_5, window_bounds = array<i64: 1, 4, 8, 8>}]} {
    %c0 = arith.constant 0 : index
    %c0_0 = arith.constant 0 : index
    %c0_1 = arith.constant 0 : index
    %0 = vector.load %arg1[%c0, %c0_0, %c0_1] : memref<1x8x32xf32, #tpu.memory_space<vmem>>, vector<1x8x32xf32>
    %1 = vector.shape_cast %0 : vector<1x8x32xf32> to vector<8x32xf32>
    %c0_2 = arith.constant 0 : index
    %c0_3 = arith.constant 0 : index
    %2 = vector.load %arg2[%c0_2, %c0_3] : memref<32x96xf32, #tpu.memory_space<vmem>>, vector<32x96xf32>
    %cst = arith.constant dense<0.000000e+00> : vector<8x96xf32>
    %3 = tpu.matmul %1, %2, %cst {dimension_numbers = #tpu.dot_dimension_numbers<[1], [0], [0], [1], [0, 0, 1, 1], [], []>} : vector<8x32xf32>, vector<32x96xf32>, vector<8x96xf32> -> vector<8x96xf32>
    %c0_4 = arith.constant 0 : index
    %c0_5 = arith.constant 0 : index
    %4 = vector.load %arg7[%c0_4, %c0_5] : memref<8x96xf32, #tpu.memory_space<vmem>>, vector<8x96xf32>
    tpu.vector_store %arg7[%c0_4, %c0_5], %3 {strides = array<i32>} : memref<8x96xf32, #tpu.memory_space<vmem>>, vector<8x96xf32>,
    %c0_6 = arith.constant 0 : index
    %c0_7 = arith.constant 0 : index
    %5 = vector.load %arg7[%c0_6, %c0_7] : memref<8x96xf32, #tpu.memory_space<vmem>>, vector<8x8xf32>
    %6 = vector.shape_cast %5 : vector<8x8xf32> to vector<1x8x8xf32>
    %cst_8 = arith.constant 0.353553385 : f32
    %7 = vector.broadcast %cst_8 : f32 to vector<1x8x8xf32>
    %8 = arith.mulf %6, %7 : vector<1x8x8xf32>
    %c0_9 = arith.constant 0 : index
    %c32 = arith.constant 32 : index
    %9 = vector.load %arg7[%c0_9, %c32] : memref<8x96xf32, #tpu.memory_space<vmem>>, vector<8x8xf32>
    %10 = vector.shape_cast %9 : vector<8x8xf32> to vector<1x8x8xf32>
    %c0_10 = arith.constant 0 : index
    %c64 = arith.constant 64 : index
    %11 = vector.load %arg7[%c0_10, %c64] : memref<8x96xf32, #tpu.memory_space<vmem>>, vector<8x8xf32>
    %12 = vector.shape_cast %11 : vector<8x8xf32> to vector<1x8x8xf32>
    "tpu.trace_start"() <{level = 10 : i32, message = "bqd,bkd->bqk"}> : () -> ()
    %cst_11 = arith.constant dense<0.000000e+00> : vector<1x8x8xf32>
    %13 = tpu.matmul %8, %10, %cst_11 {dimension_numbers = #tpu.dot_dimension_numbers<[2], [2], [1], [1], [0, 0, 0, 1, 1, 1], [0], [0]>} : vector<1x8x8xf32>, vector<1x8x8xf32>, vector<1x8x8xf32> -> vector<1x8x8xf32>
    "tpu.trace_stop"() : () -> ()
    %cst_12 = arith.constant dense<0xFF800000> : vector<1x8xf32>
    %14 = vector.multi_reduction <maximumf>, %13, %cst_12 [2] : vector<1x8x8xf32> to vector<1x8xf32>
    %15 = vector.shape_cast %14 : vector<1x8xf32> to vector<1x8x1xf32>
    %16 = vector.broadcast %15 : vector<1x8x1xf32> to vector<1x8x8xf32>
    %17 = arith.subf %13, %16 : vector<1x8x8xf32>
    %18 = math.exp %17 : vector<1x8x8xf32>
    %cst_13 = arith.constant dense<0.000000e+00> : vector<1x8xf32>
    %19 = vector.multi_reduction <add>, %18, %cst_13 [2] : vector<1x8x8xf32> to vector<1x8xf32>
    %20 = vector.shape_cast %19 : vector<1x8xf32> to vector<1x8x1xf32>
    %21 = tpu.reciprocal %20 : vector<1x8x1xf32> -> vector<1x8x1xf32>
    %22 = vector.broadcast %21 : vector<1x8x1xf32> to vector<1x8x8xf32>
    %23 = arith.mulf %18, %22 : vector<1x8x8xf32>
    %c0_14 = arith.constant 0 : index
    %c0_15 = arith.constant 0 : index
    %c0_16 = arith.constant 0 : index
    %c0_17 = arith.constant 0 : index
    %24 = vector.load %arg6[%c0_14, %c0_15, %c0_16, %c0_17] : memref<1x4x8x8xf32, #tpu.memory_space<vmem>>, vector<1x1x8x8xf32>
    %25 = vector.shape_cast %24 : vector<1x1x8x8xf32> to vector<1x8x8xf32>
    %26 = vector.shape_cast %23 : vector<1x8x8xf32> to vector<1x1x8x8xf32>
    tpu.vector_store %arg6[%c0_14, %c0_15, %c0_16, %c0_17], %26 {strides = array<i32>} : memref<1x4x8x8xf32, #tpu.memory_space<vmem>>, vector<1x1x8x8xf32>,
    "tpu.trace_start"() <{level = 10 : i32, message = "bqk,bkd->bqd"}> : () -> ()
    %cst_18 = arith.constant dense<0.000000e+00> : vector<1x8x8xf32>
    %27 = tpu.matmul %23, %12, %cst_18 {dimension_numbers = #tpu.dot_dimension_numbers<[2], [1], [1], [2], [0, 0, 0, 1, 1, 2], [0], [0]>} : vector<1x8x8xf32>, vector<1x8x8xf32>, vector<1x8x8xf32> -> vector<1x8x8xf32>
    "tpu.trace_stop"() : () -> ()
    %28 = vector.shape_cast %27 : vector<1x8x8xf32> to vector<8x8xf32>
    %c0_19 = arith.constant 0 : index
    %c0_20 = arith.constant 0 : index
    %29 = vector.load %arg8[%c0_19, %c0_20] : memref<8x32xf32, #tpu.memory_space<vmem>>, vector<8x8xf32>
    tpu.vector_store %arg8[%c0_19, %c0_20], %28 {strides = array<i32>} : memref<8x32xf32, #tpu.memory_space<vmem>>, vector<8x8xf32>,
    %c0_21 = arith.constant 0 : index
    %c8 = arith.constant 8 : index
    %30 = vector.load %arg7[%c0_21, %c8] : memref<8x96xf32, #tpu.memory_space<vmem>>, vector<8x8xf32>
    %31 = vector.shape_cast %30 : vector<8x8xf32> to vector<1x8x8xf32>
    %cst_22 = arith.constant 0.353553385 : f32
    %32 = vector.broadcast %cst_22 : f32 to vector<1x8x8xf32>
    %33 = arith.mulf %31, %32 : vector<1x8x8xf32>
    %c0_23 = arith.constant 0 : index
    %c40 = arith.constant 40 : index
    %34 = vector.load %arg7[%c0_23, %c40] : memref<8x96xf32, #tpu.memory_space<vmem>>, vector<8x8xf32>
    %35 = vector.shape_cast %34 : vector<8x8xf32> to vector<1x8x8xf32>
    %c0_24 = arith.constant 0 : index
    %c72 = arith.constant 72 : index
    %36 = vector.load %arg7[%c0_24, %c72] : memref<8x96xf32, #tpu.memory_space<vmem>>, vector<8x8xf32>
    %37 = vector.shape_cast %36 : vector<8x8xf32> to vector<1x8x8xf32>
    "tpu.trace_start"() <{level = 10 : i32, message = "bqd,bkd->bqk"}> : () -> ()
    %cst_25 = arith.constant dense<0.000000e+00> : vector<1x8x8xf32>
    %38 = tpu.matmul %33, %35, %cst_25 {dimension_numbers = #tpu.dot_dimension_numbers<[2], [2], [1], [1], [0, 0, 0, 1, 1, 1], [0], [0]>} : vector<1x8x8xf32>, vector<1x8x8xf32>, vector<1x8x8xf32> -> vector<1x8x8xf32>
    "tpu.trace_stop"() : () -> ()
    %cst_26 = arith.constant dense<0xFF800000> : vector<1x8xf32>
    %39 = vector.multi_reduction <maximumf>, %38, %cst_26 [2] : vector<1x8x8xf32> to vector<1x8xf32>
    %40 = vector.shape_cast %39 : vector<1x8xf32> to vector<1x8x1xf32>
    %41 = vector.broadcast %40 : vector<1x8x1xf32> to vector<1x8x8xf32>
    %42 = arith.subf %38, %41 : vector<1x8x8xf32>
    %43 = math.exp %42 : vector<1x8x8xf32>
    %cst_27 = arith.constant dense<0.000000e+00> : vector<1x8xf32>
    %44 = vector.multi_reduction <add>, %43, %cst_27 [2] : vector<1x8x8xf32> to vector<1x8xf32>
    %45 = vector.shape_cast %44 : vector<1x8xf32> to vector<1x8x1xf32>
    %46 = tpu.reciprocal %45 : vector<1x8x1xf32> -> vector<1x8x1xf32>
    %47 = vector.broadcast %46 : vector<1x8x1xf32> to vector<1x8x8xf32>
    %48 = arith.mulf %43, %47 : vector<1x8x8xf32>
    %c0_28 = arith.constant 0 : index
    %c1 = arith.constant 1 : index
    %c0_29 = arith.constant 0 : index
    %c0_30 = arith.constant 0 : index
    %49 = vector.load %arg6[%c0_28, %c1, %c0_29, %c0_30] : memref<1x4x8x8xf32, #tpu.memory_space<vmem>>, vector<1x1x8x8xf32>
    %50 = vector.shape_cast %49 : vector<1x1x8x8xf32> to vector<1x8x8xf32>
    %51 = vector.shape_cast %48 : vector<1x8x8xf32> to vector<1x1x8x8xf32>
    tpu.vector_store %arg6[%c0_28, %c1, %c0_29, %c0_30], %51 {strides = array<i32>} : memref<1x4x8x8xf32, #tpu.memory_space<vmem>>, vector<1x1x8x8xf32>,
    "tpu.trace_start"() <{level = 10 : i32, message = "bqk,bkd->bqd"}> : () -> ()
    %cst_31 = arith.constant dense<0.000000e+00> : vector<1x8x8xf32>
    %52 = tpu.matmul %48, %37, %cst_31 {dimension_numbers = #tpu.dot_dimension_numbers<[2], [1], [1], [2], [0, 0, 0, 1, 1, 2], [0], [0]>} : vector<1x8x8xf32>, vector<1x8x8xf32>, vector<1x8x8xf32> -> vector<1x8x8xf32>
    "tpu.trace_stop"() : () -> ()
    %53 = vector.shape_cast %52 : vector<1x8x8xf32> to vector<8x8xf32>
    %c0_32 = arith.constant 0 : index
    %c8_33 = arith.constant 8 : index
    %54 = vector.load %arg8[%c0_32, %c8_33] : memref<8x32xf32, #tpu.memory_space<vmem>>, vector<8x8xf32>
    tpu.vector_store %arg8[%c0_32, %c8_33], %53 {strides = array<i32>} : memref<8x32xf32, #tpu.memory_space<vmem>>, vector<8x8xf32>,
    %c0_34 = arith.constant 0 : index
    %c16 = arith.constant 16 : index
    %55 = vector.load %arg7[%c0_34, %c16] : memref<8x96xf32, #tpu.memory_space<vmem>>, vector<8x8xf32>
    %56 = vector.shape_cast %55 : vector<8x8xf32> to vector<1x8x8xf32>
    %cst_35 = arith.constant 0.353553385 : f32
    %57 = vector.broadcast %cst_35 : f32 to vector<1x8x8xf32>
    %58 = arith.mulf %56, %57 : vector<1x8x8xf32>
    %c0_36 = arith.constant 0 : index
    %c48 = arith.constant 48 : index
    %59 = vector.load %arg7[%c0_36, %c48] : memref<8x96xf32, #tpu.memory_space<vmem>>, vector<8x8xf32>
    %60 = vector.shape_cast %59 : vector<8x8xf32> to vector<1x8x8xf32>
    %c0_37 = arith.constant 0 : index
    %c80 = arith.constant 80 : index
    %61 = vector.load %arg7[%c0_37, %c80] : memref<8x96xf32, #tpu.memory_space<vmem>>, vector<8x8xf32>
    %62 = vector.shape_cast %61 : vector<8x8xf32> to vector<1x8x8xf32>
    "tpu.trace_start"() <{level = 10 : i32, message = "bqd,bkd->bqk"}> : () -> ()
    %cst_38 = arith.constant dense<0.000000e+00> : vector<1x8x8xf32>
    %63 = tpu.matmul %58, %60, %cst_38 {dimension_numbers = #tpu.dot_dimension_numbers<[2], [2], [1], [1], [0, 0, 0, 1, 1, 1], [0], [0]>} : vector<1x8x8xf32>, vector<1x8x8xf32>, vector<1x8x8xf32> -> vector<1x8x8xf32>
    "tpu.trace_stop"() : () -> ()
    %cst_39 = arith.constant dense<0xFF800000> : vector<1x8xf32>
    %64 = vector.multi_reduction <maximumf>, %63, %cst_39 [2] : vector<1x8x8xf32> to vector<1x8xf32>
    %65 = vector.shape_cast %64 : vector<1x8xf32> to vector<1x8x1xf32>
    %66 = vector.broadcast %65 : vector<1x8x1xf32> to vector<1x8x8xf32>
    %67 = arith.subf %63, %66 : vector<1x8x8xf32>
    %68 = math.exp %67 : vector<1x8x8xf32>
    %cst_40 = arith.constant dense<0.000000e+00> : vector<1x8xf32>
    %69 = vector.multi_reduction <add>, %68, %cst_40 [2] : vector<1x8x8xf32> to vector<1x8xf32>
    %70 = vector.shape_cast %69 : vector<1x8xf32> to vector<1x8x1xf32>
    %71 = tpu.reciprocal %70 : vector<1x8x1xf32> -> vector<1x8x1xf32>
    %72 = vector.broadcast %71 : vector<1x8x1xf32> to vector<1x8x8xf32>
    %73 = arith.mulf %68, %72 : vector<1x8x8xf32>
    %c0_41 = arith.constant 0 : index
    %c2 = arith.constant 2 : index
    %c0_42 = arith.constant 0 : index
    %c0_43 = arith.constant 0 : index
    %74 = vector.load %arg6[%c0_41, %c2, %c0_42, %c0_43] : memref<1x4x8x8xf32, #tpu.memory_space<vmem>>, vector<1x1x8x8xf32>
    %75 = vector.shape_cast %74 : vector<1x1x8x8xf32> to vector<1x8x8xf32>
    %76 = vector.shape_cast %73 : vector<1x8x8xf32> to vector<1x1x8x8xf32>
    tpu.vector_store %arg6[%c0_41, %c2, %c0_42, %c0_43], %76 {strides = array<i32>} : memref<1x4x8x8xf32, #tpu.memory_space<vmem>>, vector<1x1x8x8xf32>,
    "tpu.trace_start"() <{level = 10 : i32, message = "bqk,bkd->bqd"}> : () -> ()
    %cst_44 = arith.constant dense<0.000000e+00> : vector<1x8x8xf32>
    %77 = tpu.matmul %73, %62, %cst_44 {dimension_numbers = #tpu.dot_dimension_numbers<[2], [1], [1], [2], [0, 0, 0, 1, 1, 2], [0], [0]>} : vector<1x8x8xf32>, vector<1x8x8xf32>, vector<1x8x8xf32> -> vector<1x8x8xf32>
    "tpu.trace_stop"() : () -> ()
    %78 = vector.shape_cast %77 : vector<1x8x8xf32> to vector<8x8xf32>
    %c0_45 = arith.constant 0 : index
    %c16_46 = arith.constant 16 : index
    %79 = vector.load %arg8[%c0_45, %c16_46] : memref<8x32xf32, #tpu.memory_space<vmem>>, vector<8x8xf32>
    tpu.vector_store %arg8[%c0_45, %c16_46], %78 {strides = array<i32>} : memref<8x32xf32, #tpu.memory_space<vmem>>, vector<8x8xf32>,
    %c0_47 = arith.constant 0 : index
    %c24 = arith.constant 24 : index
    %80 = vector.load %arg7[%c0_47, %c24] : memref<8x96xf32, #tpu.memory_space<vmem>>, vector<8x8xf32>
    %81 = vector.shape_cast %80 : vector<8x8xf32> to vector<1x8x8xf32>
    %cst_48 = arith.constant 0.353553385 : f32
    %82 = vector.broadcast %cst_48 : f32 to vector<1x8x8xf32>
    %83 = arith.mulf %81, %82 : vector<1x8x8xf32>
    %c0_49 = arith.constant 0 : index
    %c56 = arith.constant 56 : index
    %84 = vector.load %arg7[%c0_49, %c56] : memref<8x96xf32, #tpu.memory_space<vmem>>, vector<8x8xf32>
    %85 = vector.shape_cast %84 : vector<8x8xf32> to vector<1x8x8xf32>
    %c0_50 = arith.constant 0 : index
    %c88 = arith.constant 88 : index
    %86 = vector.load %arg7[%c0_50, %c88] : memref<8x96xf32, #tpu.memory_space<vmem>>, vector<8x8xf32>
    %87 = vector.shape_cast %86 : vector<8x8xf32> to vector<1x8x8xf32>
    "tpu.trace_start"() <{level = 10 : i32, message = "bqd,bkd->bqk"}> : () -> ()
    %cst_51 = arith.constant dense<0.000000e+00> : vector<1x8x8xf32>
    %88 = tpu.matmul %83, %85, %cst_51 {dimension_numbers = #tpu.dot_dimension_numbers<[2], [2], [1], [1], [0, 0, 0, 1, 1, 1], [0], [0]>} : vector<1x8x8xf32>, vector<1x8x8xf32>, vector<1x8x8xf32> -> vector<1x8x8xf32>
    "tpu.trace_stop"() : () -> ()
    %cst_52 = arith.constant dense<0xFF800000> : vector<1x8xf32>
    %89 = vector.multi_reduction <maximumf>, %88, %cst_52 [2] : vector<1x8x8xf32> to vector<1x8xf32>
    %90 = vector.shape_cast %89 : vector<1x8xf32> to vector<1x8x1xf32>
    %91 = vector.broadcast %90 : vector<1x8x1xf32> to vector<1x8x8xf32>
    %92 = arith.subf %88, %91 : vector<1x8x8xf32>
    %93 = math.exp %92 : vector<1x8x8xf32>
    %cst_53 = arith.constant dense<0.000000e+00> : vector<1x8xf32>
    %94 = vector.multi_reduction <add>, %93, %cst_53 [2] : vector<1x8x8xf32> to vector<1x8xf32>
    %95 = vector.shape_cast %94 : vector<1x8xf32> to vector<1x8x1xf32>
    %96 = tpu.reciprocal %95 : vector<1x8x1xf32> -> vector<1x8x1xf32>
    %97 = vector.broadcast %96 : vector<1x8x1xf32> to vector<1x8x8xf32>
    %98 = arith.mulf %93, %97 : vector<1x8x8xf32>
    %c0_54 = arith.constant 0 : index
    %c3 = arith.constant 3 : index
    %c0_55 = arith.constant 0 : index
    %c0_56 = arith.constant 0 : index
    %99 = vector.load %arg6[%c0_54, %c3, %c0_55, %c0_56] : memref<1x4x8x8xf32, #tpu.memory_space<vmem>>, vector<1x1x8x8xf32>
    %100 = vector.shape_cast %99 : vector<1x1x8x8xf32> to vector<1x8x8xf32>
    %101 = vector.shape_cast %98 : vector<1x8x8xf32> to vector<1x1x8x8xf32>
    tpu.vector_store %arg6[%c0_54, %c3, %c0_55, %c0_56], %101 {strides = array<i32>} : memref<1x4x8x8xf32, #tpu.memory_space<vmem>>, vector<1x1x8x8xf32>,
    "tpu.trace_start"() <{level = 10 : i32, message = "bqk,bkd->bqd"}> : () -> ()
    %cst_57 = arith.constant dense<0.000000e+00> : vector<1x8x8xf32>
    %102 = tpu.matmul %98, %87, %cst_57 {dimension_numbers = #tpu.dot_dimension_numbers<[2], [1], [1], [2], [0, 0, 0, 1, 1, 2], [0], [0]>} : vector<1x8x8xf32>, vector<1x8x8xf32>, vector<1x8x8xf32> -> vector<1x8x8xf32>
    "tpu.trace_stop"() : () -> ()
    %103 = vector.shape_cast %102 : vector<1x8x8xf32> to vector<8x8xf32>
    %c0_58 = arith.constant 0 : index
    %c24_59 = arith.constant 24 : index
    %104 = vector.load %arg8[%c0_58, %c24_59] : memref<8x32xf32, #tpu.memory_space<vmem>>, vector<8x8xf32>
    tpu.vector_store %arg8[%c0_58, %c24_59], %103 {strides = array<i32>} : memref<8x32xf32, #tpu.memory_space<vmem>>, vector<8x8xf32>,
    %c0_60 = arith.constant 0 : index
    %c0_61 = arith.constant 0 : index
    %105 = vector.load %arg8[%c0_60, %c0_61] : memref<8x32xf32, #tpu.memory_space<vmem>>, vector<8x32xf32>
    %c0_62 = arith.constant 0 : index
    %c0_63 = arith.constant 0 : index
    %106 = vector.load %arg3[%c0_62, %c0_63] : memref<32x32xf32, #tpu.memory_space<vmem>>, vector<32x32xf32>
    %cst_64 = arith.constant dense<0.000000e+00> : vector<8x32xf32>
    %107 = tpu.matmul %105, %106, %cst_64 {dimension_numbers = #tpu.dot_dimension_numbers<[1], [0], [0], [1], [0, 0, 1, 1], [], []>} : vector<8x32xf32>, vector<32x32xf32>, vector<8x32xf32> -> vector<8x32xf32>
    %c0_65 = arith.constant 0 : index
    %c0_66 = arith.constant 0 : index
    %108 = vector.load %arg4[%c0_65, %c0_66] : memref<1x32xf32, #tpu.memory_space<vmem>>, vector<1x32xf32>
    %109 = vector.broadcast %108 : vector<1x32xf32> to vector<8x32xf32>
    %110 = arith.addf %107, %109 : vector<8x32xf32>
    %111 = vector.shape_cast %110 : vector<8x32xf32> to vector<1x8x32xf32>
    %c0_67 = arith.constant 0 : index
    %c0_68 = arith.constant 0 : index
    %c0_69 = arith.constant 0 : index
    %112 = vector.load %arg5[%c0_67, %c0_68, %c0_69] : memref<1x8x32xf32, #tpu.memory_space<vmem>>, vector<1x8x32xf32>
    tpu.vector_store %arg5[%c0_67, %c0_68, %c0_69], %111 {strides = array<i32>} : memref<1x8x32xf32, #tpu.memory_space<vmem>>, vector<1x8x32xf32>,
    return
  }
  func.func @transform_0(%arg0: i32) -> (i32, i32, i32) {
    %c0_i32 = arith.constant 0 : i32
    %c0_i32_0 = arith.constant 0 : i32
    %c0_i32_1 = arith.constant 0 : i32
    return %arg0, %c0_i32, %c0_i32_0 : i32, i32, i32
  }
  func.func @transform_1(%arg0: i32) -> (i32, i32) {
    %c0_i32 = arith.constant 0 : i32
    %c0_i32_0 = arith.constant 0 : i32
    %c0_i32_1 = arith.constant 0 : i32
    return %c0_i32, %c0_i32_0 : i32, i32
  }
  func.func @transform_2(%arg0: i32) -> (i32, i32) {
    %c0_i32 = arith.constant 0 : i32
    %c0_i32_0 = arith.constant 0 : i32
    %c0_i32_1 = arith.constant 0 : i32
    return %c0_i32, %c0_i32_0 : i32, i32
  }
  func.func @transform_3(%arg0: i32) -> (i32, i32) {
    %c0_i32 = arith.constant 0 : i32
    %c0_i32_0 = arith.constant 0 : i32
    %c0_i32_1 = arith.constant 0 : i32
    return %c0_i32, %c0_i32_0 : i32, i32
  }
  func.func @transform_4(%arg0: i32) -> (i32, i32, i32) {
    %c0_i32 = arith.constant 0 : i32
    %c0_i32_0 = arith.constant 0 : i32
    %c0_i32_1 = arith.constant 0 : i32
    return %arg0, %c0_i32, %c0_i32_0 : i32, i32, i32
  }
  func.func @transform_5(%arg0: i32) -> (i32, i32, i32, i32) {
    %c0_i32 = arith.constant 0 : i32
    %c0_i32_0 = arith.constant 0 : i32
    %c0_i32_1 = arith.constant 0 : i32
    %c0_i32_2 = arith.constant 0 : i32
    return %arg0, %c0_i32, %c0_i32_0, %c0_i32_1 : i32, i32, i32, i32
  }
}

module attributes {stable_mosaic.version = 11 : i64} {
  func.func @attention_kernel(%arg0: i32, %arg1: memref<1x8x32xf32, #tpu.memory_space<vmem>>, %arg2: memref<32x96xf32, #tpu.memory_space<vmem>>, %arg3: memref<32x32xf32, #tpu.memory_space<vmem>>, %arg4: memref<1x32xf32, #tpu.memory_space<vmem>>, %arg5: memref<1x8x32xf32, #tpu.memory_space<vmem>>, %arg6: memref<1x4x8x8xf32, #tpu.memory_space<vmem>>, %arg7: memref<8x96xf32, #tpu.memory_space<vmem>>, %arg8: memref<8x32xf32, #tpu.memory_space<vmem>>) attributes {dimension_semantics = [#tpu.dimension_semantics<parallel>], iteration_bounds = array<i64: 2>, scalar_prefetch = 0 : i64, scratch_operands = 2 : i64, tpu.core_type = #tpu.core_type<tc>, window_params = [{transform_indices = @transform_0, window_bounds = array<i64: 1, 8, 32>}, {pipeline_mode = #tpu.pipeline_mode<synchronous>, transform_indices = @transform_1, window_bounds = array<i64: 32, 96>}, {pipeline_mode = #tpu.pipeline_mode<synchronous>, transform_indices = @transform_2, window_bounds = array<i64: 32, 32>}, {pipeline_mode = #tpu.pipeline_mode<synchronous>, transform_indices = @transform_3, window_bounds = array<i64: 1, 32>}, {transform_indices = @transform_4, window_bounds = array<i64: 1, 8, 32>}, {transform_indices = @transform_5, window_bounds = array<i64: 1, 4, 8, 8>}]} {
    %c0 = arith.constant 0 : index
    %c0_0 = arith.constant 0 : index
    %c0_1 = arith.constant 0 : index
    %0 = vector.load %arg1[%c0, %c0_0, %c0_1] : memref<1x8x32xf32, #tpu.memory_space<vmem>>, vector<1x8x32xf32>
    %1 = vector.shape_cast %0 : vector<1x8x32xf32> to vector<8x32xf32>
    %c0_2 = arith.constant 0 : index
    %c0_3 = arith.constant 0 : index
    %2 = vector.load %arg2[%c0_2, %c0_3] : memref<32x96xf32, #tpu.memory_space<vmem>>, vector<32x96xf32>
    %cst = arith.constant dense<0.000000e+00> : vector<8x96xf32>
    %3 = tpu.matmul %1, %2, %cst {dimension_numbers = #tpu.dot_dimension_numbers<[1], [0], [0], [1], [0, 0, 1, 1], [], []>} : vector<8x32xf32>, vector<32x96xf32>, vector<8x96xf32> -> vector<8x96xf32>
    %c0_4 = arith.constant 0 : index
    %c0_5 = arith.constant 0 : index
    %4 = vector.load %arg7[%c0_4, %c0_5] : memref<8x96xf32, #tpu.memory_space<vmem>>, vector<8x96xf32>
    tpu.vector_store %arg7[%c0_4, %c0_5], %3 {strides = array<i32>} : memref<8x96xf32, #tpu.memory_space<vmem>>, vector<8x96xf32>,
    %c0_6 = arith.constant 0 : index
    %c0_7 = arith.constant 0 : index
    %5 = vector.load %arg7[%c0_6, %c0_7] : memref<8x96xf32, #tpu.memory_space<vmem>>, vector<8x8xf32>
    %6 = vector.shape_cast %5 : vector<8x8xf32> to vector<1x8x8xf32>
    %cst_8 = arith.constant 0.353553385 : f32
    %7 = vector.broadcast %cst_8 : f32 to vector<1x8x8xf32>
    %8 = arith.mulf %6, %7 : vector<1x8x8xf32>
    %c0_9 = arith.constant 0 : index
    %c32 = arith.constant 32 : index
    %9 = vector.load %arg7[%c0_9, %c32] : memref<8x96xf32, #tpu.memory_space<vmem>>, vector<8x8xf32>
    %10 = vector.shape_cast %9 : vector<8x8xf32> to vector<1x8x8xf32>
    %c0_10 = arith.constant 0 : index
    %c64 = arith.constant 64 : index
    %11 = vector.load %arg7[%c0_10, %c64] : memref<8x96xf32, #tpu.memory_space<vmem>>, vector<8x8xf32>
    %12 = vector.shape_cast %11 : vector<8x8xf32> to vector<1x8x8xf32>
    "tpu.trace_start"() <{level = 10 : i32, message = "bqd,bkd->bqk"}> : () -> ()
    %cst_11 = arith.constant dense<0.000000e+00> : vector<1x8x8xf32>
    %13 = tpu.matmul %8, %10, %cst_11 {dimension_numbers = #tpu.dot_dimension_numbers<[2], [2], [1], [1], [0, 0, 0, 1, 1, 1], [0], [0]>} : vector<1x8x8xf32>, vector<1x8x8xf32>, vector<1x8x8xf32> -> vector<1x8x8xf32>
    "tpu.trace_stop"() : () -> ()
    %cst_12 = arith.constant dense<0xFF800000> : vector<1x8xf32>
    %14 = vector.multi_reduction <maximumf>, %13, %cst_12 [2] : vector<1x8x8xf32> to vector<1x8xf32>
    %15 = vector.shape_cast %14 : vector<1x8xf32> to vector<1x8x1xf32>
    %16 = vector.broadcast %15 : vector<1x8x1xf32> to vector<1x8x8xf32>
    %17 = arith.subf %13, %16 : vector<1x8x8xf32>
    %18 = math.exp %17 : vector<1x8x8xf32>
    %cst_13 = arith.constant dense<0.000000e+00> : vector<1x8xf32>
    %19 = vector.multi_reduction <add>, %18, %cst_13 [2] : vector<1x8x8xf32> to vector<1x8xf32>
    %20 = vector.shape_cast %19 : vector<1x8xf32> to vector<1x8x1xf32>
    %21 = tpu.reciprocal %20 : vector<1x8x1xf32> -> vector<1x8x1xf32>
    %22 = vector.broadcast %21 : vector<1x8x1xf32> to vector<1x8x8xf32>
    %23 = arith.mulf %18, %22 : vector<1x8x8xf32>
    %c0_14 = arith.constant 0 : index
    %c0_15 = arith.constant 0 : index
    %c0_16 = arith.constant 0 : index
    %c0_17 = arith.constant 0 : index
    %24 = vector.load %arg6[%c0_14, %c0_15, %c0_16, %c0_17] : memref<1x4x8x8xf32, #tpu.memory_space<vmem>>, vector<1x1x8x8xf32>
    %25 = vector.shape_cast %24 : vector<1x1x8x8xf32> to vector<1x8x8xf32>
    %26 = vector.shape_cast %23 : vector<1x8x8xf32> to vector<1x1x8x8xf32>
    tpu.vector_store %arg6[%c0_14, %c0_15, %c0_16, %c0_17], %26 {strides = array<i32>} : memref<1x4x8x8xf32, #tpu.memory_space<vmem>>, vector<1x1x8x8xf32>,
    "tpu.trace_start"() <{level = 10 : i32, message = "bqk,bkd->bqd"}> : () -> ()
    %cst_18 = arith.constant dense<0.000000e+00> : vector<1x8x8xf32>
    %27 = tpu.matmul %23, %12, %cst_18 {dimension_numbers = #tpu.dot_dimension_numbers<[2], [1], [1], [2], [0, 0, 0, 1, 1, 2], [0], [0]>} : vector<1x8x8xf32>, vector<1x8x8xf32>, vector<1x8x8xf32> -> vector<1x8x8xf32>
    "tpu.trace_stop"() : () -> ()
    %28 = vector.shape_cast %27 : vector<1x8x8xf32> to vector<8x8xf32>
    %c0_19 = arith.constant 0 : index
    %c0_20 = arith.constant 0 : index
    %29 = vector.load %arg8[%c0_19, %c0_20] : memref<8x32xf32, #tpu.memory_space<vmem>>, vector<8x8xf32>
    tpu.vector_store %arg8[%c0_19, %c0_20], %28 {strides = array<i32>} : memref<8x32xf32, #tpu.memory_space<vmem>>, vector<8x8xf32>,
    %c0_21 = arith.constant 0 : index
    %c8 = arith.constant 8 : index
    %30 = vector.load %arg7[%c0_21, %c8] : memref<8x96xf32, #tpu.memory_space<vmem>>, vector<8x8xf32>
    %31 = vector.shape_cast %30 : vector<8x8xf32> to vector<1x8x8xf32>
    %cst_22 = arith.constant 0.353553385 : f32
    %32 = vector.broadcast %cst_22 : f32 to vector<1x8x8xf32>
    %33 = arith.mulf %31, %32 : vector<1x8x8xf32>
    %c0_23 = arith.constant 0 : index
    %c40 = arith.constant 40 : index
    %34 = vector.load %arg7[%c0_23, %c40] : memref<8x96xf32, #tpu.memory_space<vmem>>, vector<8x8xf32>
    %35 = vector.shape_cast %34 : vector<8x8xf32> to vector<1x8x8xf32>
    %c0_24 = arith.constant 0 : index
    %c72 = arith.constant 72 : index
    %36 = vector.load %arg7[%c0_24, %c72] : memref<8x96xf32, #tpu.memory_space<vmem>>, vector<8x8xf32>
    %37 = vector.shape_cast %36 : vector<8x8xf32> to vector<1x8x8xf32>
    "tpu.trace_start"() <{level = 10 : i32, message = "bqd,bkd->bqk"}> : () -> ()
    %cst_25 = arith.constant dense<0.000000e+00> : vector<1x8x8xf32>
    %38 = tpu.matmul %33, %35, %cst_25 {dimension_numbers = #tpu.dot_dimension_numbers<[2], [2], [1], [1], [0, 0, 0, 1, 1, 1], [0], [0]>} : vector<1x8x8xf32>, vector<1x8x8xf32>, vector<1x8x8xf32> -> vector<1x8x8xf32>
    "tpu.trace_stop"() : () -> ()
    %cst_26 = arith.constant dense<0xFF800000> : vector<1x8xf32>
    %39 = vector.multi_reduction <maximumf>, %38, %cst_26 [2] : vector<1x8x8xf32> to vector<1x8xf32>
    %40 = vector.shape_cast %39 : vector<1x8xf32> to vector<1x8x1xf32>
    %41 = vector.broadcast %40 : vector<1x8x1xf32> to vector<1x8x8xf32>
    %42 = arith.subf %38, %41 : vector<1x8x8xf32>
    %43 = math.exp %42 : vector<1x8x8xf32>
    %cst_27 = arith.constant dense<0.000000e+00> : vector<1x8xf32>
    %44 = vector.multi_reduction <add>, %43, %cst_27 [2] : vector<1x8x8xf32> to vector<1x8xf32>
    %45 = vector.shape_cast %44 : vector<1x8xf32> to vector<1x8x1xf32>
    %46 = tpu.reciprocal %45 : vector<1x8x1xf32> -> vector<1x8x1xf32>
    %47 = vector.broadcast %46 : vector<1x8x1xf32> to vector<1x8x8xf32>
    %48 = arith.mulf %43, %47 : vector<1x8x8xf32>
    %c0_28 = arith.constant 0 : index
    %c1 = arith.constant 1 : index
    %c0_29 = arith.constant 0 : index
    %c0_30 = arith.constant 0 : index
    %49 = vector.load %arg6[%c0_28, %c1, %c0_29, %c0_30] : memref<1x4x8x8xf32, #tpu.memory_space<vmem>>, vector<1x1x8x8xf32>
    %50 = vector.shape_cast %49 : vector<1x1x8x8xf32> to vector<1x8x8xf32>
    %51 = vector.shape_cast %48 : vector<1x8x8xf32> to vector<1x1x8x8xf32>
    tpu.vector_store %arg6[%c0_28, %c1, %c0_29, %c0_30], %51 {strides = array<i32>} : memref<1x4x8x8xf32, #tpu.memory_space<vmem>>, vector<1x1x8x8xf32>,
    "tpu.trace_start"() <{level = 10 : i32, message = "bqk,bkd->bqd"}> : () -> ()
    %cst_31 = arith.constant dense<0.000000e+00> : vector<1x8x8xf32>
    %52 = tpu.matmul %48, %37, %cst_31 {dimension_numbers = #tpu.dot_dimension_numbers<[2], [1], [1], [2], [0, 0, 0, 1, 1, 2], [0], [0]>} : vector<1x8x8xf32>, vector<1x8x8xf32>, vector<1x8x8xf32> -> vector<1x8x8xf32>
    "tpu.trace_stop"() : () -> ()
    %53 = vector.shape_cast %52 : vector<1x8x8xf32> to vector<8x8xf32>
    %c0_32 = arith.constant 0 : index
    %c8_33 = arith.constant 8 : index
    %54 = vector.load %arg8[%c0_32, %c8_33] : memref<8x32xf32, #tpu.memory_space<vmem>>, vector<8x8xf32>
    tpu.vector_store %arg8[%c0_32, %c8_33], %53 {strides = array<i32>} : memref<8x32xf32, #tpu.memory_space<vmem>>, vector<8x8xf32>,
    %c0_34 = arith.constant 0 : index
    %c16 = arith.constant 16 : index
    %55 = vector.load %arg7[%c0_34, %c16] : memref<8x96xf32, #tpu.memory_space<vmem>>, vector<8x8xf32>
    %56 = vector.shape_cast %55 : vector<8x8xf32> to vector<1x8x8xf32>
    %cst_35 = arith.constant 0.353553385 : f32
    %57 = vector.broadcast %cst_35 : f32 to vector<1x8x8xf32>
    %58 = arith.mulf %56, %57 : vector<1x8x8xf32>
    %c0_36 = arith.constant 0 : index
    %c48 = arith.constant 48 : index
    %59 = vector.load %arg7[%c0_36, %c48] : memref<8x96xf32, #tpu.memory_space<vmem>>, vector<8x8xf32>
    %60 = vector.shape_cast %59 : vector<8x8xf32> to vector<1x8x8xf32>
    %c0_37 = arith.constant 0 : index
    %c80 = arith.constant 80 : index
    %61 = vector.load %arg7[%c0_37, %c80] : memref<8x96xf32, #tpu.memory_space<vmem>>, vector<8x8xf32>
    %62 = vector.shape_cast %61 : vector<8x8xf32> to vector<1x8x8xf32>
    "tpu.trace_start"() <{level = 10 : i32, message = "bqd,bkd->bqk"}> : () -> ()
    %cst_38 = arith.constant dense<0.000000e+00> : vector<1x8x8xf32>
    %63 = tpu.matmul %58, %60, %cst_38 {dimension_numbers = #tpu.dot_dimension_numbers<[2], [2], [1], [1], [0, 0, 0, 1, 1, 1], [0], [0]>} : vector<1x8x8xf32>, vector<1x8x8xf32>, vector<1x8x8xf32> -> vector<1x8x8xf32>
    "tpu.trace_stop"() : () -> ()
    %cst_39 = arith.constant dense<0xFF800000> : vector<1x8xf32>
    %64 = vector.multi_reduction <maximumf>, %63, %cst_39 [2] : vector<1x8x8xf32> to vector<1x8xf32>
    %65 = vector.shape_cast %64 : vector<1x8xf32> to vector<1x8x1xf32>
    %66 = vector.broadcast %65 : vector<1x8x1xf32> to vector<1x8x8xf32>
    %67 = arith.subf %63, %66 : vector<1x8x8xf32>
    %68 = math.exp %67 : vector<1x8x8xf32>
    %cst_40 = arith.constant dense<0.000000e+00> : vector<1x8xf32>
    %69 = vector.multi_reduction <add>, %68, %cst_40 [2] : vector<1x8x8xf32> to vector<1x8xf32>
    %70 = vector.shape_cast %69 : vector<1x8xf32> to vector<1x8x1xf32>
    %71 = tpu.reciprocal %70 : vector<1x8x1xf32> -> vector<1x8x1xf32>
    %72 = vector.broadcast %71 : vector<1x8x1xf32> to vector<1x8x8xf32>
    %73 = arith.mulf %68, %72 : vector<1x8x8xf32>
    %c0_41 = arith.constant 0 : index
    %c2 = arith.constant 2 : index
    %c0_42 = arith.constant 0 : index
    %c0_43 = arith.constant 0 : index
    %74 = vector.load %arg6[%c0_41, %c2, %c0_42, %c0_43] : memref<1x4x8x8xf32, #tpu.memory_space<vmem>>, vector<1x1x8x8xf32>
    %75 = vector.shape_cast %74 : vector<1x1x8x8xf32> to vector<1x8x8xf32>
    %76 = vector.shape_cast %73 : vector<1x8x8xf32> to vector<1x1x8x8xf32>
    tpu.vector_store %arg6[%c0_41, %c2, %c0_42, %c0_43], %76 {strides = array<i32>} : memref<1x4x8x8xf32, #tpu.memory_space<vmem>>, vector<1x1x8x8xf32>,
    "tpu.trace_start"() <{level = 10 : i32, message = "bqk,bkd->bqd"}> : () -> ()
    %cst_44 = arith.constant dense<0.000000e+00> : vector<1x8x8xf32>
    %77 = tpu.matmul %73, %62, %cst_44 {dimension_numbers = #tpu.dot_dimension_numbers<[2], [1], [1], [2], [0, 0, 0, 1, 1, 2], [0], [0]>} : vector<1x8x8xf32>, vector<1x8x8xf32>, vector<1x8x8xf32> -> vector<1x8x8xf32>
    "tpu.trace_stop"() : () -> ()
    %78 = vector.shape_cast %77 : vector<1x8x8xf32> to vector<8x8xf32>
    %c0_45 = arith.constant 0 : index
    %c16_46 = arith.constant 16 : index
    %79 = vector.load %arg8[%c0_45, %c16_46] : memref<8x32xf32, #tpu.memory_space<vmem>>, vector<8x8xf32>
    tpu.vector_store %arg8[%c0_45, %c16_46], %78 {strides = array<i32>} : memref<8x32xf32, #tpu.memory_space<vmem>>, vector<8x8xf32>,
    %c0_47 = arith.constant 0 : index
    %c24 = arith.constant 24 : index
    %80 = vector.load %arg7[%c0_47, %c24] : memref<8x96xf32, #tpu.memory_space<vmem>>, vector<8x8xf32>
    %81 = vector.shape_cast %80 : vector<8x8xf32> to vector<1x8x8xf32>
    %cst_48 = arith.constant 0.353553385 : f32
    %82 = vector.broadcast %cst_48 : f32 to vector<1x8x8xf32>
    %83 = arith.mulf %81, %82 : vector<1x8x8xf32>
    %c0_49 = arith.constant 0 : index
    %c56 = arith.constant 56 : index
    %84 = vector.load %arg7[%c0_49, %c56] : memref<8x96xf32, #tpu.memory_space<vmem>>, vector<8x8xf32>
    %85 = vector.shape_cast %84 : vector<8x8xf32> to vector<1x8x8xf32>
    %c0_50 = arith.constant 0 : index
    %c88 = arith.constant 88 : index
    %86 = vector.load %arg7[%c0_50, %c88] : memref<8x96xf32, #tpu.memory_space<vmem>>, vector<8x8xf32>
    %87 = vector.shape_cast %86 : vector<8x8xf32> to vector<1x8x8xf32>
    "tpu.trace_start"() <{level = 10 : i32, message = "bqd,bkd->bqk"}> : () -> ()
    %cst_51 = arith.constant dense<0.000000e+00> : vector<1x8x8xf32>
    %88 = tpu.matmul %83, %85, %cst_51 {dimension_numbers = #tpu.dot_dimension_numbers<[2], [2], [1], [1], [0, 0, 0, 1, 1, 1], [0], [0]>} : vector<1x8x8xf32>, vector<1x8x8xf32>, vector<1x8x8xf32> -> vector<1x8x8xf32>
    "tpu.trace_stop"() : () -> ()
    %cst_52 = arith.constant dense<0xFF800000> : vector<1x8xf32>
    %89 = vector.multi_reduction <maximumf>, %88, %cst_52 [2] : vector<1x8x8xf32> to vector<1x8xf32>
    %90 = vector.shape_cast %89 : vector<1x8xf32> to vector<1x8x1xf32>
    %91 = vector.broadcast %90 : vector<1x8x1xf32> to vector<1x8x8xf32>
    %92 = arith.subf %88, %91 : vector<1x8x8xf32>
    %93 = math.exp %92 : vector<1x8x8xf32>
    %cst_53 = arith.constant dense<0.000000e+00> : vector<1x8xf32>
    %94 = vector.multi_reduction <add>, %93, %cst_53 [2] : vector<1x8x8xf32> to vector<1x8xf32>
    %95 = vector.shape_cast %94 : vector<1x8xf32> to vector<1x8x1xf32>
    %96 = tpu.reciprocal %95 : vector<1x8x1xf32> -> vector<1x8x1xf32>
    %97 = vector.broadcast %96 : vector<1x8x1xf32> to vector<1x8x8xf32>
    %98 = arith.mulf %93, %97 : vector<1x8x8xf32>
    %c0_54 = arith.constant 0 : index
    %c3 = arith.constant 3 : index
    %c0_55 = arith.constant 0 : index
    %c0_56 = arith.constant 0 : index
    %99 = vector.load %arg6[%c0_54, %c3, %c0_55, %c0_56] : memref<1x4x8x8xf32, #tpu.memory_space<vmem>>, vector<1x1x8x8xf32>
    %100 = vector.shape_cast %99 : vector<1x1x8x8xf32> to vector<1x8x8xf32>
    %101 = vector.shape_cast %98 : vector<1x8x8xf32> to vector<1x1x8x8xf32>
    tpu.vector_store %arg6[%c0_54, %c3, %c0_55, %c0_56], %101 {strides = array<i32>} : memref<1x4x8x8xf32, #tpu.memory_space<vmem>>, vector<1x1x8x8xf32>,
    "tpu.trace_start"() <{level = 10 : i32, message = "bqk,bkd->bqd"}> : () -> ()
    %cst_57 = arith.constant dense<0.000000e+00> : vector<1x8x8xf32>
    %102 = tpu.matmul %98, %87, %cst_57 {dimension_numbers = #tpu.dot_dimension_numbers<[2], [1], [1], [2], [0, 0, 0, 1, 1, 2], [0], [0]>} : vector<1x8x8xf32>, vector<1x8x8xf32>, vector<1x8x8xf32> -> vector<1x8x8xf32>
    "tpu.trace_stop"() : () -> ()
    %103 = vector.shape_cast %102 : vector<1x8x8xf32> to vector<8x8xf32>
    %c0_58 = arith.constant 0 : index
    %c24_59 = arith.constant 24 : index
    %104 = vector.load %arg8[%c0_58, %c24_59] : memref<8x32xf32, #tpu.memory_space<vmem>>, vector<8x8xf32>
    tpu.vector_store %arg8[%c0_58, %c24_59], %103 {strides = array<i32>} : memref<8x32xf32, #tpu.memory_space<vmem>>, vector<8x8xf32>,
    %c0_60 = arith.constant 0 : index
    %c0_61 = arith.constant 0 : index
    %105 = vector.load %arg8[%c0_60, %c0_61] : memref<8x32xf32, #tpu.memory_space<vmem>>, vector<8x32xf32>
    %c0_62 = arith.constant 0 : index
    %c0_63 = arith.constant 0 : index
    %106 = vector.load %arg3[%c0_62, %c0_63] : memref<32x32xf32, #tpu.memory_space<vmem>>, vector<32x32xf32>
    %cst_64 = arith.constant dense<0.000000e+00> : vector<8x32xf32>
    %107 = tpu.matmul %105, %106, %cst_64 {dimension_numbers = #tpu.dot_dimension_numbers<[1], [0], [0], [1], [0, 0, 1, 1], [], []>} : vector<8x32xf32>, vector<32x32xf32>, vector<8x32xf32> -> vector<8x32xf32>
    %c0_65 = arith.constant 0 : index
    %c0_66 = arith.constant 0 : index
    %108 = vector.load %arg4[%c0_65, %c0_66] : memref<1x32xf32, #tpu.memory_space<vmem>>, vector<1x32xf32>
    %109 = vector.broadcast %108 : vector<1x32xf32> to vector<8x32xf32>
    %110 = arith.addf %107, %109 : vector<8x32xf32>
    %111 = vector.shape_cast %110 : vector<8x32xf32> to vector<1x8x32xf32>
    %c0_67 = arith.constant 0 : index
    %c0_68 = arith.constant 0 : index
    %c0_69 = arith.constant 0 : index
    %112 = vector.load %arg5[%c0_67, %c0_68, %c0_69] : memref<1x8x32xf32, #tpu.memory_space<vmem>>, vector<1x8x32xf32>
    tpu.vector_store %arg5[%c0_67, %c0_68, %c0_69], %111 {strides = array<i32>} : memref<1x8x32xf32, #tpu.memory_space<vmem>>, vector<1x8x32xf32>,
    return
  }
  func.func @transform_0(%arg0: i32) -> (i32, i32, i32) {
    %c0_i32 = arith.constant 0 : i32
    %c0_i32_0 = arith.constant 0 : i32
    %c0_i32_1 = arith.constant 0 : i32
    return %arg0, %c0_i32, %c0_i32_0 : i32, i32, i32
  }
  func.func @transform_1(%arg0: i32) -> (i32, i32) {
    %c0_i32 = arith.constant 0 : i32
    %c0_i32_0 = arith.constant 0 : i32
    %c0_i32_1 = arith.constant 0 : i32
    return %c0_i32, %c0_i32_0 : i32, i32
  }
  func.func @transform_2(%arg0: i32) -> (i32, i32) {
    %c0_i32 = arith.constant 0 : i32
    %c0_i32_0 = arith.constant 0 : i32
    %c0_i32_1 = arith.constant 0 : i32
    return %c0_i32, %c0_i32_0 : i32, i32
  }
  func.func @transform_3(%arg0: i32) -> (i32, i32) {
    %c0_i32 = arith.constant 0 : i32
    %c0_i32_0 = arith.constant 0 : i32
    %c0_i32_1 = arith.constant 0 : i32
    return %c0_i32, %c0_i32_0 : i32, i32
  }
  func.func @transform_4(%arg0: i32) -> (i32, i32, i32) {
    %c0_i32 = arith.constant 0 : i32
    %c0_i32_0 = arith.constant 0 : i32
    %c0_i32_1 = arith.constant 0 : i32
    return %arg0, %c0_i32, %c0_i32_0 : i32, i32, i32
  }
  func.func @transform_5(%arg0: i32) -> (i32, i32, i32, i32) {
    %c0_i32 = arith.constant 0 : i32
    %c0_i32_0 = arith.constant 0 : i32
    %c0_i32_1 = arith.constant 0 : i32
    %c0_i32_2 = arith.constant 0 : i32
    return %arg0, %c0_i32, %c0_i32_0, %c0_i32_1 : i32, i32, i32, i32
  }
}

</mosaic_0001>

<bundles_post_ra>
// kernel: tpu_custom_call.1
= control target key start
LH: loop header
LB: loop body
LE: loop exit
PB: predicated region body
PF: predicated region fallthrough
CT: control target
= control target key end

     0   :  { %11 = vsyncpa [#allocation5], 0  ;;  %s1478_s0 = inlined_call_operand.hbm [shape: f32[2,8,32], index: 0, kind: input, shape index: {}]   ;;  %s1479_s1 = inlined_call_operand.hbm [shape: f32[32,96], index: 1, kind: input, shape index: {}]   ;;  %s1480_s2 = inlined_call_operand.hbm [shape: f32[32,32], index: 2, kind: input, shape index: {}]   ;;  %s1481_s3 = inlined_call_operand.vmem [shape: f32[1,32], index: 3, kind: input, shape index: {}]   ;;  %s1482_s4 = inlined_call_operand.hbm [shape: f32[2,8,32], index: 4, kind: output, shape index: {0}]   ;;  %s1483_s5 = inlined_call_operand.hbm [shape: f32[2,4,8,8], index: 5, kind: output, shape index: {1}]  }
   0x1   :  { %13 = vsyncpa [#allocation5 + $0x1], 0 }
   0x2   :  { %14 = vsyncpa [#allocation8], 0 }
   0x3   :  { %15 = vsyncpa [#allocation6], 0 }
   0x4   :  { %17 = vsyncpa [#allocation6 + $0x1], 0 }
   0x5   :  { %18 = vsyncpa [#allocation12], 0 }
   0x6   :  { %20 = vsyncpa [#allocation12 + $0x1], 0  ;;  %s1250_s18 = smov 0   ;;  %s1252_s19 = smov 0  }
   0x7   :  { %s1254_s20 = smov 0   ;;  %s1256_s21 = smov 0  }
   0x8 LB: > { %s183_s24 = sshll.u32 %s1479_s1, 4  ;;  %s1274_s25 = sadd.s32 4294967295, %s1199_s21   ;;  %s1199_s21 = sphi %s1256_s21, %s1496_s21   ;;  %s1195_s20 = sphi %s1254_s20, %s1495_s20   ;;  %s1191_s19 = sphi %s1252_s19, %s1494_s19   ;;  %s1187_s18 = sphi %s1250_s18, %s1493_s18   ;;  %s184_s24 = int_to_ptr.hbm [resolvable:$true] %s183_s24 }
   0x9   : > { %p864_p0 = scmp.ge.s32.totalorder %s1199_s21, 1  ;;  %p47_p1 = scmp.eq.s32.totalorder %s1274_s25, 0 }
   0xa   : > { %p172_p2 = scmp.lt.s32.totalorder %s1199_s21, 3  ;;  %s1201_s27 = smov [#allocation7]  }
   0xb   : > { %s185_s28 = sshll.u32 %s1201_s27, 4  ;;  %s197_s6 = sshll.u32 %s1480_s2, 4  ;;  %s186_s28 = int_to_ptr.vmem [resolvable:$true] %s185_s28  ;;  %s198_s6 = int_to_ptr.hbm [resolvable:$true] %s197_s6 }
   0xc   : > { %p1279_p3 = pnand %p864_p0, %p172_p2  ;;  %s1202_s7 = smov [#allocation9]  }
   0xd   : > { %s199_s8 = sshll.u32 %s1202_s7, 4  ;;  %s1203_s9 = smov 128   ;;  %s200_s8 = int_to_ptr.vmem [resolvable:$true] %s199_s8 }
   0xe   : > { %p915_p4 = pneg %p1279_p3  ;;  %s1204_s10 = smov 8  }
   0xf   : > { %s863_s11 = sadd.s32 4294967294, %s1199_s21   ;;  %s1293_s12 = sadd.s32 1, %s1199_s21  }
  0x10   : > { %p916_p6 = pnand %p915_p4, %p47_p1  ;;  %s30_s13 = ssub.s32 %s1199_s21, %s1293_s12 }
  0x11   : > { %s33_s14 = sadd.s32 1, %s1195_s20  ;;  %p31_p7 = scmp.eq.s32.totalorder %s30_s13, 0 }
  0x12   : > { %918 = dma.hbm_to_vmem [thread:$0]  (!%p916_p6), %s184_s24, 512, %s186_s28, [#allocation8], %s1203_s9, %s1203_s9, %s1204_s10  }
  0x13   : > { %921 = dma.hbm_to_vmem [thread:$0]  (!%p916_p6), %s198_s6, 512, %s200_s8, [#allocation8], %s1203_s9, %s1203_s9, %s1204_s10  }
  0x14   : > { %p40_p8 = scmp.ne.s32.totalorder %s1195_s20, %s1191_s19  ;;  %p41_p9 = scmp.eq.s32.totalorder %s1199_s21, 0 }
  0x15   : > { %p46_p10 = scmp.ne.s32.totalorder %s1191_s19, %s1187_s18  ;;  %p133_p13 = scmp.eq.s32.totalorder %s1274_s25, 1 }
  0x16   : > { %s1304_s15 = scalar_select %p31_p7, %s1195_s20, %s33_s14  }
  0x17   : > { %p1306_p11 = por %p41_p9, %p40_p8  ;;  %p1312_p12 = por %p47_p1, %p46_p10 }
  0x18   : > { %p139_p0 = scmp.eq.s32.totalorder %s863_s11, 1  ;;  %p935_p2 = scmp.lt.s32.totalorder %s1199_s21, 2 }
  0x19   : > { %s216_s22 = sand.u32 1, %s1195_s20   ;;  %p1319_p4 = por %p133_p13, %p40_p8 }
  0x1a   : > { %p1323_p6 = por %p139_p0, %p46_p10  ;;  %s868_s27 = sshll.u32 %s216_s22, 3 }
  0x1b   : > { %s869_s28 = sshll.u32 %s1199_s21, 3  ;;  %s220_s7 = scalar_lea.vmem [#allocation4], %s868_s27 }
  0x1c   : > { %s224_s6 = scalar_lea.hbm %s1478_s0, %s869_s28  ;;  %s228_s8 = sshll.u32 %s220_s7, 4  ;;  %s229_s8 = int_to_ptr.vmem [resolvable:$true] %s228_s8 }
  0x1d   : > { %s226_s9 = sshll.u32 %s224_s6, 4  ;;  %p1333_p7 = pnand %p935_p2, %p1306_p11  ;;  %s227_s9 = int_to_ptr.hbm [resolvable:$true] %s226_s9 }
  0x1e   : > { %s217_s11 = scalar_lea.sflag [#allocation5], %s216_s22  ;;  %s1067_s13 = sshra.s32 %s227_s9, 4  ;;  %s1068_s13 = int_to_ptr.hbm [resolvable:$true] %s1067_s13 }
  0x1f   : > { %s1069_s14 = scalar_lea.hbm %s1068_s13, 8  ;;  %p1071_p9 = pneg %p1333_p7 }
  0x20   : > { %p1070_p8 = scmp.ne.s32.totalorder %s1068_s13, %s1069_s14  ;;  %s1074_s29 = scalar_lea.hbm %s1478_s0, 16 }
  0x21   : > { %p1075_p11 = scmp.lt.s32.totalorder %s1068_s13, %s1478_s0  ;;  %p1076_p0 = scmp.lt.s32.totalorder %s1074_s29, %s1069_s14 }
  0x22   : > { %p1072_p10 = pnand %p1071_p9, %p1070_p8 }
  0x23   : > { %p1077_p2 = por %p1076_p0, %p1075_p11 }
  0x24   : > { %p1073_p13 = pneg %p1072_p10 }
  0x26   : > { %p1078_p5 = pnand %p1077_p2, %p1073_p13 }
  0x28   : > { %1081 = shalt.err (!%p1078_p5)
}
  0x29   : > { %925 = dma.hbm_to_vmem [thread:$0]  (!%p1333_p7), %s227_s9, 128, %s229_s8, %s217_s11  }
  0x2a   : > { %237 = sbr.rel (%p1279_p3) target bundleno = 1115 (0x45b), region = 36  ;;  %s1350_s22 = sand.u32 (!%p1279_p3), 1, %s1191_s19  }
  0x2b   : > { %s1484_s6 = sshll.u32 (!%p1279_p3), %s1350_s22, 3  ;;  %s240_s7 = scalar_lea.sflag (!%p1279_p3), [#allocation5], %s1350_s22 }
  0x2c   : > { %s243_s13 = scalar_lea.vmem (!%p1279_p3), [#allocation4], %s1484_s6 }
  0x2f   : > { %1170 = dma.done.wait (%p1312_p12), %s240_s7, 128  }
  0x30   : > { %1172 = vsyncadd (%p1312_p12), %s240_s7, 4294967168 }
  0x31   : > { %1174 = dma.done.wait (%p47_p1), [#allocation8], 1024  }
  0x32   : > { %1176 = vsyncadd (%p47_p1), [#allocation8], 4294966272  ;;  %v290_v0 = vld [vmem:[#allocation7 + $0x18] sm:$0xff]  ;;  %v289_v1 = vld [vmem:[#allocation7 + $0x10] sm:$0xff]  ;;  %vm291_vm0 = vcmask 261120   ;;  %vm315_vm1 = vcmask 785408  }
  0x33   : > { %307 = vmatpush.msra.mxu0 %v290_v0  ;;  %v288_v2 = vld [vmem:[#allocation7 + $0x8] sm:$0xff]  ;;  %v287_v3 = vld [vmem:[#allocation7] sm:$0xff]  ;;  %v286_v4 = vld [vmem:[%s243_s13] sm:$0xff]  ;;  %s1205_s26 = smov 72   ;;  %s1206_s17 = smov 96   ;;  %vm322_vm2 = vcmask 64512  }
  0x34   : > { %s1207_s8 = smov 120   ;;  %s1208_s9 = smov 112  }
  0x35   : > { %308 = vmatpush.msra.mxu0 %v289_v1  ;;  %s1209_s10 = smov 88   ;;  %s1210_s11 = smov 80  }
  0x36   : > { %s1211_s14 = smov 104   ;;  %s1212_s27 = smov 56  }
  0x37   : > { %309 = vmatpush.msra.mxu0 %v288_v2  ;;  %s1213_s28 = smov 40   ;;  %s1214_s29 = smov 64  }
  0x38   : > { %s1215_s30 = smov 48   ;;  %s875_s16 = sshll.u32 %s1350_s22, 5 }
  0x39   : > { %310 = vmatpush.msra.mxu0 %v287_v3  ;;  %s1402_s7 = scalar_lea.vmem [#allocation11], %s875_s16  ;;  %s1216_s13 = smov 8  }
  0x3a   : > { %876 = vmatmul.msk.f32.vlgmr.msra.gmra.mxu0 %vm291_vm0, %v286_v4 }
  0xb7   : > { %v312_v5 = vpop.f32.mrf.mxu0 }
  0xb8   : > { %316 = vst.msk [vmem:[#allocation2] sm:$0xff] %vm315_vm1, %v312_v5 }
  0xbf   : > { %v1365_v6 = vld [vmem:[#allocation2] sm:$0xff] }
  0xc0   : > { %586 = vrot.lane.b32.xlu2 %v1365_v6, %s1205_s26  ;;  %320 = vrot.lane.b32.xlu0 %v1365_v6, %s1206_s17  ;;  %v401_v7 = vmul.f32 0.35355338, %v1365_v6  ;;  %s1217_s26 = smov 24   ;;  %s1218_s17 = smov 16  }
  0xc2   : > { %403 = vrot.lane.b32.xlu1 %v401_v7, %s1207_s8  ;;  %s735_s8 = sshll.u32 %s1402_s7, 4  ;;  %s736_s8 = int_to_ptr.vmem [resolvable:$true] %s735_s8 }
  0xc8   : > { %493 = vrot.lane.b32.xlu2 %v401_v7, %s1208_s9  ;;  %406 = vrot.lane.b32.xlu0 %v1365_v6, %s1209_s10  ;;  %s900_s9 = sshll.u32 %s1274_s25, 5 }
  0xca   : > { %496 = vrot.lane.b32.xlu1 %v1365_v6, %s1210_s11 }
  0xd0   : > { %583 = vrot.lane.b32.xlu0 %v401_v7, %s1211_s14  ;;  %s734_s14 = scalar_lea.hbm %s1483_s5, %s900_s9 }
 0x11a   : > { %v587_v8 = vpop.permute.xlu2 %586 }
 0x11b   : > { %888 = vmatpush.xpose.msk.msrb.mxu0 %vm322_vm2, %v587_v8 }
 0x122   : > { %v494_v13 = vpop.permute.xlu2 %493 }
 0x132   : > { %v321_v9 = vpop.permute.xlu0 %320 }
 0x133   : > { %877 = vmatpush.xpose.msk.msra.mxu1 %vm322_vm2, %v321_v9 }
 0x134   : > { %v404_v10 = vpop.permute.xlu1 %403 }
 0x136   : > { %878 = vmatmul.msk.f32.vlgmr.msra.gmra.mxu1 %vm322_vm2, %v401_v7 }
 0x13a   : > { %v407_v11 = vpop.permute.xlu0 %406 }
 0x13b   : > { %880 = vmatpush.xpose.msk.msra.mxu3 %vm322_vm2, %v407_v11 }
 0x13c   : > { %v497_v12 = vpop.permute.xlu1 %496 }
 0x13d   : > { %884 = vmatpush.xpose.msk.msrb.mxu1 %vm322_vm2, %v497_v12 }
 0x13e   : > { %881 = vmatmul.msk.f32.vlgmr.msra.gmra.mxu3 %vm322_vm2, %v404_v10 }
 0x140   : > { %885 = vmatmul.msk.f32.vlgmr.msrb.gmra.mxu1 %vm322_vm2, %v494_v13 }
 0x142   : > { %v584_v14 = vpop.permute.xlu0 %583 }
 0x143   : > { %889 = vmatmul.msk.f32.vlgmr.msrb.gmra.mxu0 %vm322_vm2, %v584_v14 }
 0x1b3   : > { %v345_v15 = vpop.f32.mrf.mxu1 }
 0x1b4   : > { %v348_v16 = vsel %vm322_vm2, %v345_v15, -inf }
 0x1b5   : > { %349 = vmax.xlane.f32.xlu1 %v348_v16 }
 0x1bd   : > { %v519_v17 = vpop.f32.mrf.mxu1 }
 0x1be   : > { %v522_v18 = vsel %vm322_vm2, %v519_v17, -inf }
 0x1bf   : > { %523 = vmax.xlane.f32.xlu0 %v522_v18 }
 0x1c0   : > { %v609_v21 = vpop.f32.mrf.mxu0 }
 0x1c1   : > { %v429_v19 = vpop.f32.mrf.mxu3  ;;  %v612_v22 = vsel %vm322_vm2, %v609_v21, -inf }
 0x1c2   : > { %v432_v20 = vsel %vm322_vm2, %v429_v19, -inf }
 0x1c3   : > { %433 = vmax.xlane.f32.xlu2 %v432_v20 }
 0x1cb   : > { %613 = vmax.xlane.f32.xlu2 %v612_v22 }
 0x1d3   : > { %458 = vrot.lane.b32.xlu0 %v1365_v6, %s1212_s27  ;;  %s737_s27 = sshll.u32 %s734_s14, 4  ;;  %s738_s27 = int_to_ptr.hbm [resolvable:$true] %s737_s27 }
 0x228   : > { %v350_v23 = vpop.xlane.xlu1 %349 }
 0x229   : > { %v351_v24 = vsub.f32 %v345_v15, %v350_v23 }
 0x22b   : > { %v352_v25 = vmul.f32 1.442695, %v351_v24 }
 0x22d   : > { %991 = vpow2.f32 %v352_v25 }
 0x232   : > { %v524_v26 = vpop.xlane.xlu0 %523 }
 0x233   : > { %v992_v27 = vpop.eup %991  ;;  %v525_v28 = vsub.f32 %v519_v17, %v524_v26 }
 0x234   : > { %v354_v29 = vsel %vm322_vm2, %v992_v27, 0.0 }
 0x235   : > { %v526_v30 = vmul.f32 1.442695, %v525_v28  ;;  %355 = vadd.xlane.f32.xlu1 %v354_v29 }
 0x236   : > { %v434_v31 = vpop.xlane.xlu2 %433 }
 0x237   : > { %993 = vpow2.f32 %v526_v30  ;;  %v435_v32 = vsub.f32 %v429_v19, %v434_v31 }
 0x239   : > { %v436_v33 = vmul.f32 1.442695, %v435_v32 }
 0x23b   : > { %995 = vpow2.f32 %v436_v33 }
 0x23d   : > { %v1386_v34 = vpop.eup %993 }
 0x23e   : > { %v614_v35 = vpop.xlane.xlu2 %613  ;;  %v528_v36 = vsel %vm322_vm2, %v1386_v34, 0.0 }
 0x23f   : > { %v615_v37 = vsub.f32 %v609_v21, %v614_v35  ;;  %529 = vadd.xlane.f32.xlu0 %v528_v36  ;;  %v674_v36 = vld [vmem:[#allocation9 + $0x18] sm:$0xff] }
 0x240   : > { %694 = vmatpush.msra.mxu1 %v674_v36 }
 0x241   : > { %v1390_v38 = vpop.eup %995  ;;  %v616_v39 = vmul.f32 1.442695, %v615_v37  ;;  %v673_v37 = vld [vmem:[#allocation9 + $0x10] sm:$0xff] }
 0x242   : > { %v438_v40 = vsel %vm322_vm2, %v1390_v38, 0.0  ;;  %695 = vmatpush.msra.mxu1 %v673_v37 }
 0x243   : > { %997 = vpow2.f32 %v616_v39  ;;  %439 = vadd.xlane.f32.xlu2 %v438_v40  ;;  %v671_v39 = vld [vmem:[#allocation9] sm:$0xff] }
 0x245   : > { %v459_v44 = vpop.permute.xlu0 %458 }
 0x249   : > { %v1394_v41 = vpop.eup %997 }
 0x24a   : > { %v618_v42 = vsel %vm322_vm2, %v1394_v41, 0.0 }
 0x24b   : > { %619 = vadd.xlane.f32.xlu1 %v618_v42 }
 0x253   : > { %638 = vrot.lane.b32.xlu0 %v1365_v6, %s1213_s28  ;;  %s709_s28 = scalar_lea.sflag [#allocation12], %s1350_s22 }
 0x25b   : > { %373 = vrot.lane.b32.xlu2 %v1365_v6, %s1214_s29  ;;  %s1111_s29 = sshra.s32 %s738_s27, 4  ;;  %s1112_s29 = int_to_ptr.hbm [resolvable:$true] %s1111_s29 }
 0x25c   : > { %p1118_p12 = scmp.lt.s32.totalorder %s1112_s29, %s1483_s5 }
 0x264   : > { %548 = vrot.lane.b32.xlu1 %v1365_v6, %s1215_s30  ;;  %s1113_s30 = scalar_lea.hbm %s1112_s29, 32 }
 0x265   : > { %p1114_p1 = scmp.ne.s32.totalorder %s1112_s29, %s1113_s30 }
 0x267   : > { %p1115_p3 = pnand %p1114_p1, %p1319_p4 }
 0x269   : > { %p1116_p5 = pneg %p1115_p3 }
 0x2a8   : > { %v356_v43 = vpop.xlane.xlu1 %355 }
 0x2a9   : > { %999 = vrcp.f32 %v356_v43  ;;  %v368_v49 = vand.u32 2147483648, %v356_v43  ;;  %v366_v51 = vand.u32 2147483647, %v356_v43  ;;  %vm362_vm4 = vweird.f32 %v356_v43 }
 0x2ab   : > { %v369_v54 = vor.u32 1.1754944e-38, %v368_v49  ;;  %vm367_vm6 = vcmp.eq.f32.partialorder %v366_v51, 8.507059e+37 }
 0x2af   : > { %v1000_v45 = vpop.eup %999 }
 0x2b0   : > { %v358_v46 = vmul.f32 %v1000_v45, %v356_v43  ;;  %vm363_vm3 = vweird.f32 %v1000_v45 }
 0x2b1   : > { %vm364_vm5 = vmor %vm362_vm4, %vm363_vm3 }
 0x2b2   : > { %v359_v47 = vsub.f32 1.0, %v358_v46  ;;  %v530_v48 = vpop.xlane.xlu0 %529 }
 0x2b3   : > { %1001 = vrcp.f32 %v530_v48  ;;  %v540_v62 = vand.u32 2147483647, %v530_v48  ;;  %v542_v63 = vand.u32 2147483648, %v530_v48  ;;  %vm536_vm8 = vweird.f32 %v530_v48 }
 0x2b4   : > { %v360_v50 = vmul.f32 %v1000_v45, %v359_v47 }
 0x2b5   : > { %vm541_vm10 = vcmp.eq.f32.partialorder %v540_v62, 8.507059e+37  ;;  %v543_v6 = vor.u32 1.1754944e-38, %v542_v63 }
 0x2b6   : > { %v440_v52 = vpop.xlane.xlu2 %439  ;;  %v361_v53 = vadd.f32 %v1000_v45, %v360_v50 }
 0x2b7   : > { %1003 = vrcp.f32 %v440_v52  ;;  %v452_v7 = vand.u32 2147483648, %v440_v52  ;;  %v450_v9 = vand.u32 2147483647, %v440_v52  ;;  %vm446_vm12 = vweird.f32 %v440_v52 }
 0x2b8   : > { %v365_v55 = vsel %vm364_vm5, %v1000_v45, %v361_v53  ;;  %vm488_vm5 = vcmask 130112  }
 0x2b9   : > { %v1002_v56 = vpop.eup %1001  ;;  %v370_v57 = vsel %vm367_vm6, %v369_v54, %v365_v55  ;;  %v453_v15 = vor.u32 1.1754944e-38, %v452_v7  ;;  %vm451_vm14 = vcmp.eq.f32.partialorder %v450_v9, 8.507059e+37  ;;  %vm668_vm6 = vcmask 261312  }
 0x2ba   : > { %v532_v58 = vmul.f32 %v1002_v56, %v530_v48  ;;  %v371_v59 = vmul.f32 %v992_v27, %v370_v57  ;;  %vm537_vm7 = vweird.f32 %v1002_v56 }
 0x2bb   : > { %vm538_vm9 = vmor %vm536_vm8, %vm537_vm7 }
 0x2bc   : > { %v533_v60 = vsub.f32 1.0, %v532_v58  ;;  %372 = vst.msk [vmem:[%s1402_s7] sm:$0xff] %vm322_vm2, %v371_v59 }
 0x2bd   : > { %v1004_v61 = vpop.eup %1003 }
 0x2be   : > { %v534_v0 = vmul.f32 %v1002_v56, %v533_v60  ;;  %v442_v1 = vmul.f32 %v1004_v61, %v440_v52  ;;  %v374_v2 = vpop.permute.xlu2 %373  ;;  %v620_v3 = vpop.xlane.xlu1 %619  ;;  %vm447_vm11 = vweird.f32 %v1004_v61 }
 0x2bf   : > { %1005 = vrcp.f32 %v620_v3  ;;  %394 = vmatpush.msra.mxu2 %v374_v2  ;;  %vm448_vm13 = vmor %vm446_vm12, %vm447_vm11  ;;  %v632_v22 = vand.u32 2147483648, %v620_v3  ;;  %v630_v24 = vand.u32 2147483647, %v620_v3  ;;  %vm626_vm1 = vweird.f32 %v620_v3 }
 0x2c0   : > { %v535_v4 = vadd.f32 %v1002_v56, %v534_v0  ;;  %v443_v5 = vsub.f32 1.0, %v442_v1  ;;  %879 = vmatmul.msk.f32.vlgmr.msra.gmra.mxu2 %vm322_vm2, %v371_v59 }
 0x2c1   : > { %479 = vmatpush.msrb.mxu2 %v459_v44  ;;  %v633_v26 = vor.u32 1.1754944e-38, %v632_v22  ;;  %vm631_vm4 = vcmp.eq.f32.partialorder %v630_v24, 8.507059e+37 }
 0x2c2   : > { %v444_v8 = vmul.f32 %v1004_v61, %v443_v5  ;;  %v539_v10 = vsel %vm538_vm9, %v1002_v56, %v535_v4 }
 0x2c3   : > { %v544_v11 = vsel %vm541_vm10, %v543_v6, %v539_v10 }
 0x2c4   : > { %v445_v12 = vadd.f32 %v1004_v61, %v444_v8  ;;  %v545_v13 = vmul.f32 %v1386_v34, %v544_v11 }
 0x2c5   : > { %v1006_v14 = vpop.eup %1005  ;;  %v639_v16 = vpop.permute.xlu0 %638 }
 0x2c6   : > { %v622_v17 = vmul.f32 %v1006_v14, %v620_v3  ;;  %659 = vmatpush.msra.mxu2 %v639_v16  ;;  %v449_v18 = vsel %vm448_vm13, %v1004_v61, %v445_v12  ;;  %886 = vst.msk [vmem:[%s1402_s7 + $0x10] sm:$0xff] %vm322_vm2, %v545_v13  ;;  %vm627_vm15 = vweird.f32 %v1006_v14 }
 0x2c7   : > { %v454_v19 = vsel %vm451_vm14, %v453_v15, %v449_v18  ;;  %vm628_vm3 = vmor %vm626_vm1, %vm627_vm15 }
 0x2c8   : > { %v623_v20 = vsub.f32 1.0, %v622_v17  ;;  %v455_v21 = vmul.f32 %v1390_v38, %v454_v19  ;;  %v672_v38 = vld [vmem:[#allocation9 + $0x8] sm:$0xff] }
 0x2c9   : > { %696 = vmatpush.msra.mxu1 %v672_v38 }
 0x2ca   : > { %v624_v23 = vmul.f32 %v1006_v14, %v623_v20  ;;  %882 = vst.msk [vmem:[%s1402_s7 + $0x8] sm:$0xff] %vm322_vm2, %v455_v21  ;;  %883 = vmatmul.msk.f32.vlgmr.msrb.gmra.mxu2 %vm322_vm2, %v455_v21 }
 0x2cb   : > { %697 = vmatpush.msra.mxu1 %v671_v39 }
 0x2cc   : > { %v625_v25 = vadd.f32 %v1006_v14, %v624_v23 }
 0x2ce   : > { %v629_v27 = vsel %vm628_vm3, %v1006_v14, %v625_v25 }
 0x2cf   : > { %v634_v28 = vsel %vm631_vm4, %v633_v26, %v629_v27 }
 0x2d0   : > { %v635_v29 = vmul.f32 %v1394_v41, %v634_v28 }
 0x2d2   : > { %890 = vst.msk [vmem:[%s1402_s7 + $0x18] sm:$0xff] %vm322_vm2, %v635_v29  ;;  %891 = vmatmul.msk.f32.vlgmr.msra.gmra.mxu2 %vm322_vm2, %v635_v29 }
 0x2d6   : > { %v549_v30 = vpop.permute.xlu1 %548 }
 0x2d7   : > { %569 = vmatpush.msrb.mxu3 %v549_v30 }
 0x2d8   : > { %887 = vmatmul.msk.f32.vlgmr.msrb.gmra.mxu3 %vm322_vm2, %v545_v13 }
 0x343   : > { %v396_v31 = vpop.f32.mrf.mxu2 }
 0x344   : > { %399 = vst.msk [vmem:[#allocation3] sm:$0xff] %vm322_vm2, %v396_v31  ;;  %vm578_vm2 = vcmask 195712  }
 0x34d   : > { %v481_v32 = vpop.f32.mrf.mxu2 }
 0x34e   : > { %485 = vrot.lane.b32.xlu2 %v481_v32, %s1216_s13 }
 0x355   : > { %v661_v33 = vpop.f32.mrf.mxu2 }
 0x356   : > { %665 = vrot.lane.b32.xlu0 %v661_v33, %s1217_s26  ;;  %s1117_s26 = scalar_lea.hbm %s1483_s5, 64 }
 0x357   : > { %p1119_p7 = scmp.lt.s32.totalorder %s1117_s26, %s1113_s30 }
 0x359   : > { %p1120_p8 = por %p1119_p7, %p1118_p12 }
 0x35b   : > { %v571_v34 = vpop.f32.mrf.mxu3  ;;  %p1121_p9 = pnand %p1120_p8, %p1116_p5 }
 0x35c   : > { %575 = vrot.lane.b32.xlu1 %v571_v34, %s1218_s17 }
 0x3a8   : > { %v486_v35 = vpop.permute.xlu2 %485 }
 0x3a9   : > { %489 = vst.msk [vmem:[#allocation3] sm:$0xff] %vm488_vm5, %v486_v35 }
 0x3c8   : > { %v666_v41 = vpop.permute.xlu0 %665 }
 0x3ce   : > { %v576_v40 = vpop.permute.xlu1 %575 }
 0x3cf   : > { %579 = vst.msk [vmem:[#allocation3] sm:$0xff] %vm578_vm2, %v576_v40 }
 0x3d0   : > { %669 = vst.msk [vmem:[#allocation3] sm:$0xff] %vm668_vm6, %v666_v41 }
 0x3d7   : > { %v670_v42 = vld [vmem:[#allocation3] sm:$0xff] }
 0x3d8   : > { %892 = vmatmul.msk.f32.vlgmr.msra.gmra.mxu1 %vm291_vm0, %v670_v42 }
 0x3d9   : > { %1124 = shalt.err (!%p1121_p9)
}
 0x3da   : > { %s1219_s9 = smov 128   ;;  %s895_s10 = sshll.u32 %s1274_s25, 3  ;;  %v990_v43 = vld [vmem:[%s1481_s3] ss:$0 sm:$0xff] }
 0x3db   : > { %912 = dma.vmem_to_hbm [thread:$0]  (%p1319_p4), %s736_s8, 512, %s738_s27, %s709_s28, %s1219_s9, %s1219_s9, %s1216_s13  }
 0x3dc   : > { %s719_s16 = scalar_lea.hbm %s1482_s4, %s895_s10  ;;  %s1491_s30 = sshll.u32 %s1350_s22, 3 }
 0x3dd   : > { %s278_s7 = scalar_lea.vmem [#allocation10], %s1491_s30  ;;  %s723_s17 = sshll.u32 %s719_s16, 4  ;;  %s724_s17 = int_to_ptr.hbm [resolvable:$true] %s723_s17 }
 0x3de   : > { %s721_s26 = sshll.u32 %s278_s7, 4  ;;  %s704_s25 = scalar_lea.sflag [#allocation6], %s1350_s22  ;;  %s722_s26 = int_to_ptr.vmem [resolvable:$true] %s721_s26 }
 0x3df   : > { %s1139_s13 = sshra.s32 %s724_s17, 4  ;;  %s1145_s9 = scalar_lea.hbm %s1482_s4, 16  ;;  %s1140_s13 = int_to_ptr.hbm [resolvable:$true] %s1139_s13 }
 0x3e0   : > { %s1141_s8 = scalar_lea.hbm %s1140_s13, 8  ;;  %p1146_p0 = scmp.lt.s32.totalorder %s1140_s13, %s1482_s4 }
 0x3e1   : > { %p1142_p10 = scmp.ne.s32.totalorder %s1140_s13, %s1141_s8  ;;  %p1147_p2 = scmp.lt.s32.totalorder %s1145_s9, %s1141_s8 }
 0x3e3   : > { %p1143_p13 = pnand %p1142_p10, %p1319_p4  ;;  %p1148_p1 = por %p1147_p2, %p1146_p0 }
 0x3e5   : > { %p1144_p11 = pneg %p1143_p13 }
 0x3e7   : > { %p1149_p3 = pnand %p1148_p1, %p1144_p11 }
 0x455   : > { %v699_v44 = vpop.f32.mrf.mxu1 }
 0x456   : > { %v700_v45 = vadd.f32 %v990_v43, %v699_v44 }
 0x458   : > { %702 = vst.msk [vmem:[%s278_s7] sm:$0xff] %vm291_vm0, %v700_v45 }
 0x459   : > { %1152 = shalt.err (!%p1149_p3)
}
 0x45a   : > { %911 = dma.vmem_to_hbm [thread:$0]  (%p1319_p4), %s722_s26, 128, %s724_s17, %s704_s25  }
 0x45b PF: > { %s752_s22 = sand.u32 1, %s1187_s18   ;;  %p1492_p5 = scmp.ge.s32.totalorder %s1199_s21, 2 }
 0x45c   : > { %s753_s14 = scalar_lea.sflag [#allocation6], %s752_s22 }
 0x45d   : > { %p927_p12 = pnand %p1492_p5, %p1323_p6 }
 0x45f   : > { %p928_p7 = pneg %p927_p12 }
 0x461   : > { %1178 = dma.done.wait (%p928_p7), %s753_s14, 128  }
 0x462   : > { %1180 = vsyncadd (%p928_p7), %s753_s14, 4294967168  ;;  %s763_s16 = scalar_lea.sflag [#allocation12], %s752_s22 }
 0x463   : > { %1182 = dma.done.wait (%p928_p7), %s763_s16, 512  }
 0x464   : > { %1184 = vsyncadd (%p928_p7), %s763_s16, 4294966784  ;;  %p23_p4 = scmp.ge.s32.totalorder %s1293_s12, 4   ;;  %s1493_s18 = smov %s1191_s19 }
 0x465   : > { %s1494_s19 = smov %s1195_s20  ;;  %s1495_s20 = smov %s1304_s15 }
 0x466   : > { %s1496_s21 = smov %s1293_s12  ;;  %25 = sbr.rel (!%p23_p4) target bundleno = 8 (0x8), region = 109 }
 0x46b   :  { %769 = vsyncpa [#allocation5], 1 }
 0x46c   :  { %771 = vsyncpa [#allocation5 + $0x1], 1 }
 0x46d   :  { %772 = vsyncpa [#allocation8], 1 }
 0x46e   :  { %773 = vsyncpa [#allocation6], 1 }
 0x46f   :  { %775 = vsyncpa [#allocation6 + $0x1], 1 }
 0x470   :  { %776 = vsyncpa [#allocation12], 1 }
 0x471   :  { %778 = vsyncpa [#allocation12 + $0x1], 1 }

// kernel: tpu_custom_call.1
= control target key start
LH: loop header
LB: loop body
LE: loop exit
PB: predicated region body
PF: predicated region fallthrough
CT: control target
= control target key end

     0   :  { %11 = vsyncpa [#allocation5], 0  ;;  %s1478_s0 = inlined_call_operand.hbm [shape: f32[2,8,32], index: 0, kind: input, shape index: {}]   ;;  %s1479_s1 = inlined_call_operand.hbm [shape: f32[32,96], index: 1, kind: input, shape index: {}]   ;;  %s1480_s2 = inlined_call_operand.hbm [shape: f32[32,32], index: 2, kind: input, shape index: {}]   ;;  %s1481_s3 = inlined_call_operand.vmem [shape: f32[1,32], index: 3, kind: input, shape index: {}]   ;;  %s1482_s4 = inlined_call_operand.hbm [shape: f32[2,8,32], index: 4, kind: output, shape index: {0}]   ;;  %s1483_s5 = inlined_call_operand.hbm [shape: f32[2,4,8,8], index: 5, kind: output, shape index: {1}]  }
   0x1   :  { %13 = vsyncpa [#allocation5 + $0x1], 0 }
   0x2   :  { %14 = vsyncpa [#allocation8], 0 }
   0x3   :  { %15 = vsyncpa [#allocation6], 0 }
   0x4   :  { %17 = vsyncpa [#allocation6 + $0x1], 0 }
   0x5   :  { %18 = vsyncpa [#allocation12], 0 }
   0x6   :  { %20 = vsyncpa [#allocation12 + $0x1], 0  ;;  %s1250_s18 = smov 0   ;;  %s1252_s19 = smov 0  }
   0x7   :  { %s1254_s20 = smov 0   ;;  %s1256_s21 = smov 0  }
   0x8 LB: > { %s183_s24 = sshll.u32 %s1479_s1, 4  ;;  %s1274_s25 = sadd.s32 4294967295, %s1199_s21   ;;  %s1199_s21 = sphi %s1256_s21, %s1496_s21   ;;  %s1195_s20 = sphi %s1254_s20, %s1495_s20   ;;  %s1191_s19 = sphi %s1252_s19, %s1494_s19   ;;  %s1187_s18 = sphi %s1250_s18, %s1493_s18   ;;  %s184_s24 = int_to_ptr.hbm [resolvable:$true] %s183_s24 }
   0x9   : > { %p864_p0 = scmp.ge.s32.totalorder %s1199_s21, 1  ;;  %p47_p1 = scmp.eq.s32.totalorder %s1274_s25, 0 }
   0xa   : > { %p172_p2 = scmp.lt.s32.totalorder %s1199_s21, 3  ;;  %s1201_s27 = smov [#allocation7]  }
   0xb   : > { %s185_s28 = sshll.u32 %s1201_s27, 4  ;;  %s197_s6 = sshll.u32 %s1480_s2, 4  ;;  %s186_s28 = int_to_ptr.vmem [resolvable:$true] %s185_s28  ;;  %s198_s6 = int_to_ptr.hbm [resolvable:$true] %s197_s6 }
   0xc   : > { %p1279_p3 = pnand %p864_p0, %p172_p2  ;;  %s1202_s7 = smov [#allocation9]  }
   0xd   : > { %s199_s8 = sshll.u32 %s1202_s7, 4  ;;  %s1203_s9 = smov 128   ;;  %s200_s8 = int_to_ptr.vmem [resolvable:$true] %s199_s8 }
   0xe   : > { %p915_p4 = pneg %p1279_p3  ;;  %s1204_s10 = smov 8  }
   0xf   : > { %s863_s11 = sadd.s32 4294967294, %s1199_s21   ;;  %s1293_s12 = sadd.s32 1, %s1199_s21  }
  0x10   : > { %p916_p6 = pnand %p915_p4, %p47_p1  ;;  %s30_s13 = ssub.s32 %s1199_s21, %s1293_s12 }
  0x11   : > { %s33_s14 = sadd.s32 1, %s1195_s20  ;;  %p31_p7 = scmp.eq.s32.totalorder %s30_s13, 0 }
  0x12   : > { %918 = dma.hbm_to_vmem [thread:$0]  (!%p916_p6), %s184_s24, 512, %s186_s28, [#allocation8], %s1203_s9, %s1203_s9, %s1204_s10  }
  0x13   : > { %921 = dma.hbm_to_vmem [thread:$0]  (!%p916_p6), %s198_s6, 512, %s200_s8, [#allocation8], %s1203_s9, %s1203_s9, %s1204_s10  }
  0x14   : > { %p40_p8 = scmp.ne.s32.totalorder %s1195_s20, %s1191_s19  ;;  %p41_p9 = scmp.eq.s32.totalorder %s1199_s21, 0 }
  0x15   : > { %p46_p10 = scmp.ne.s32.totalorder %s1191_s19, %s1187_s18  ;;  %p133_p13 = scmp.eq.s32.totalorder %s1274_s25, 1 }
  0x16   : > { %s1304_s15 = scalar_select %p31_p7, %s1195_s20, %s33_s14  }
  0x17   : > { %p1306_p11 = por %p41_p9, %p40_p8  ;;  %p1312_p12 = por %p47_p1, %p46_p10 }
  0x18   : > { %p139_p0 = scmp.eq.s32.totalorder %s863_s11, 1  ;;  %p935_p2 = scmp.lt.s32.totalorder %s1199_s21, 2 }
  0x19   : > { %s216_s22 = sand.u32 1, %s1195_s20   ;;  %p1319_p4 = por %p133_p13, %p40_p8 }
  0x1a   : > { %p1323_p6 = por %p139_p0, %p46_p10  ;;  %s868_s27 = sshll.u32 %s216_s22, 3 }
  0x1b   : > { %s869_s28 = sshll.u32 %s1199_s21, 3  ;;  %s220_s7 = scalar_lea.vmem [#allocation4], %s868_s27 }
  0x1c   : > { %s224_s6 = scalar_lea.hbm %s1478_s0, %s869_s28  ;;  %s228_s8 = sshll.u32 %s220_s7, 4  ;;  %s229_s8 = int_to_ptr.vmem [resolvable:$true] %s228_s8 }
  0x1d   : > { %s226_s9 = sshll.u32 %s224_s6, 4  ;;  %p1333_p7 = pnand %p935_p2, %p1306_p11  ;;  %s227_s9 = int_to_ptr.hbm [resolvable:$true] %s226_s9 }
  0x1e   : > { %s217_s11 = scalar_lea.sflag [#allocation5], %s216_s22  ;;  %s1067_s13 = sshra.s32 %s227_s9, 4  ;;  %s1068_s13 = int_to_ptr.hbm [resolvable:$true] %s1067_s13 }
  0x1f   : > { %s1069_s14 = scalar_lea.hbm %s1068_s13, 8  ;;  %p1071_p9 = pneg %p1333_p7 }
  0x20   : > { %p1070_p8 = scmp.ne.s32.totalorder %s1068_s13, %s1069_s14  ;;  %s1074_s29 = scalar_lea.hbm %s1478_s0, 16 }
  0x21   : > { %p1075_p11 = scmp.lt.s32.totalorder %s1068_s13, %s1478_s0  ;;  %p1076_p0 = scmp.lt.s32.totalorder %s1074_s29, %s1069_s14 }
  0x22   : > { %p1072_p10 = pnand %p1071_p9, %p1070_p8 }
  0x23   : > { %p1077_p2 = por %p1076_p0, %p1075_p11 }
  0x24   : > { %p1073_p13 = pneg %p1072_p10 }
  0x26   : > { %p1078_p5 = pnand %p1077_p2, %p1073_p13 }
  0x28   : > { %1081 = shalt.err (!%p1078_p5)
}
  0x29   : > { %925 = dma.hbm_to_vmem [thread:$0]  (!%p1333_p7), %s227_s9, 128, %s229_s8, %s217_s11  }
  0x2a   : > { %237 = sbr.rel (%p1279_p3) target bundleno = 1115 (0x45b), region = 36  ;;  %s1350_s22 = sand.u32 (!%p1279_p3), 1, %s1191_s19  }
  0x2b   : > { %s1484_s6 = sshll.u32 (!%p1279_p3), %s1350_s22, 3  ;;  %s240_s7 = scalar_lea.sflag (!%p1279_p3), [#allocation5], %s1350_s22 }
  0x2c   : > { %s243_s13 = scalar_lea.vmem (!%p1279_p3), [#allocation4], %s1484_s6 }
  0x2f   : > { %1170 = dma.done.wait (%p1312_p12), %s240_s7, 128  }
  0x30   : > { %1172 = vsyncadd (%p1312_p12), %s240_s7, 4294967168 }
  0x31   : > { %1174 = dma.done.wait (%p47_p1), [#allocation8], 1024  }
  0x32   : > { %1176 = vsyncadd (%p47_p1), [#allocation8], 4294966272  ;;  %v290_v0 = vld [vmem:[#allocation7 + $0x18] sm:$0xff]  ;;  %v289_v1 = vld [vmem:[#allocation7 + $0x10] sm:$0xff]  ;;  %vm291_vm0 = vcmask 261120   ;;  %vm315_vm1 = vcmask 785408  }
  0x33   : > { %307 = vmatpush.msra.mxu0 %v290_v0  ;;  %v288_v2 = vld [vmem:[#allocation7 + $0x8] sm:$0xff]  ;;  %v287_v3 = vld [vmem:[#allocation7] sm:$0xff]  ;;  %v286_v4 = vld [vmem:[%s243_s13] sm:$0xff]  ;;  %s1205_s26 = smov 72   ;;  %s1206_s17 = smov 96   ;;  %vm322_vm2 = vcmask 64512  }
  0x34   : > { %s1207_s8 = smov 120   ;;  %s1208_s9 = smov 112  }
  0x35   : > { %308 = vmatpush.msra.mxu0 %v289_v1  ;;  %s1209_s10 = smov 88   ;;  %s1210_s11 = smov 80  }
  0x36   : > { %s1211_s14 = smov 104   ;;  %s1212_s27 = smov 56  }
  0x37   : > { %309 = vmatpush.msra.mxu0 %v288_v2  ;;  %s1213_s28 = smov 40   ;;  %s1214_s29 = smov 64  }
  0x38   : > { %s1215_s30 = smov 48   ;;  %s875_s16 = sshll.u32 %s1350_s22, 5 }
  0x39   : > { %310 = vmatpush.msra.mxu0 %v287_v3  ;;  %s1402_s7 = scalar_lea.vmem [#allocation11], %s875_s16  ;;  %s1216_s13 = smov 8  }
  0x3a   : > { %876 = vmatmul.msk.f32.vlgmr.msra.gmra.mxu0 %vm291_vm0, %v286_v4 }
  0xb7   : > { %v312_v5 = vpop.f32.mrf.mxu0 }
  0xb8   : > { %316 = vst.msk [vmem:[#allocation2] sm:$0xff] %vm315_vm1, %v312_v5 }
  0xbf   : > { %v1365_v6 = vld [vmem:[#allocation2] sm:$0xff] }
  0xc0   : > { %586 = vrot.lane.b32.xlu2 %v1365_v6, %s1205_s26  ;;  %320 = vrot.lane.b32.xlu0 %v1365_v6, %s1206_s17  ;;  %v401_v7 = vmul.f32 0.35355338, %v1365_v6  ;;  %s1217_s26 = smov 24   ;;  %s1218_s17 = smov 16  }
  0xc2   : > { %403 = vrot.lane.b32.xlu1 %v401_v7, %s1207_s8  ;;  %s735_s8 = sshll.u32 %s1402_s7, 4  ;;  %s736_s8 = int_to_ptr.vmem [resolvable:$true] %s735_s8 }
  0xc8   : > { %493 = vrot.lane.b32.xlu2 %v401_v7, %s1208_s9  ;;  %406 = vrot.lane.b32.xlu0 %v1365_v6, %s1209_s10  ;;  %s900_s9 = sshll.u32 %s1274_s25, 5 }
  0xca   : > { %496 = vrot.lane.b32.xlu1 %v1365_v6, %s1210_s11 }
  0xd0   : > { %583 = vrot.lane.b32.xlu0 %v401_v7, %s1211_s14  ;;  %s734_s14 = scalar_lea.hbm %s1483_s5, %s900_s9 }
 0x11a   : > { %v587_v8 = vpop.permute.xlu2 %586 }
 0x11b   : > { %888 = vmatpush.xpose.msk.msrb.mxu0 %vm322_vm2, %v587_v8 }
 0x122   : > { %v494_v13 = vpop.permute.xlu2 %493 }
 0x132   : > { %v321_v9 = vpop.permute.xlu0 %320 }
 0x133   : > { %877 = vmatpush.xpose.msk.msra.mxu1 %vm322_vm2, %v321_v9 }
 0x134   : > { %v404_v10 = vpop.permute.xlu1 %403 }
 0x136   : > { %878 = vmatmul.msk.f32.vlgmr.msra.gmra.mxu1 %vm322_vm2, %v401_v7 }
 0x13a   : > { %v407_v11 = vpop.permute.xlu0 %406 }
 0x13b   : > { %880 = vmatpush.xpose.msk.msra.mxu3 %vm322_vm2, %v407_v11 }
 0x13c   : > { %v497_v12 = vpop.permute.xlu1 %496 }
 0x13d   : > { %884 = vmatpush.xpose.msk.msrb.mxu1 %vm322_vm2, %v497_v12 }
 0x13e   : > { %881 = vmatmul.msk.f32.vlgmr.msra.gmra.mxu3 %vm322_vm2, %v404_v10 }
 0x140   : > { %885 = vmatmul.msk.f32.vlgmr.msrb.gmra.mxu1 %vm322_vm2, %v494_v13 }
 0x142   : > { %v584_v14 = vpop.permute.xlu0 %583 }
 0x143   : > { %889 = vmatmul.msk.f32.vlgmr.msrb.gmra.mxu0 %vm322_vm2, %v584_v14 }
 0x1b3   : > { %v345_v15 = vpop.f32.mrf.mxu1 }
 0x1b4   : > { %v348_v16 = vsel %vm322_vm2, %v345_v15, -inf }
 0x1b5   : > { %349 = vmax.xlane.f32.xlu1 %v348_v16 }
 0x1bd   : > { %v519_v17 = vpop.f32.mrf.mxu1 }
 0x1be   : > { %v522_v18 = vsel %vm322_vm2, %v519_v17, -inf }
 0x1bf   : > { %523 = vmax.xlane.f32.xlu0 %v522_v18 }
 0x1c0   : > { %v609_v21 = vpop.f32.mrf.mxu0 }
 0x1c1   : > { %v429_v19 = vpop.f32.mrf.mxu3  ;;  %v612_v22 = vsel %vm322_vm2, %v609_v21, -inf }
 0x1c2   : > { %v432_v20 = vsel %vm322_vm2, %v429_v19, -inf }
 0x1c3   : > { %433 = vmax.xlane.f32.xlu2 %v432_v20 }
 0x1cb   : > { %613 = vmax.xlane.f32.xlu2 %v612_v22 }
 0x1d3   : > { %458 = vrot.lane.b32.xlu0 %v1365_v6, %s1212_s27  ;;  %s737_s27 = sshll.u32 %s734_s14, 4  ;;  %s738_s27 = int_to_ptr.hbm [resolvable:$true] %s737_s27 }
 0x228   : > { %v350_v23 = vpop.xlane.xlu1 %349 }
 0x229   : > { %v351_v24 = vsub.f32 %v345_v15, %v350_v23 }
 0x22b   : > { %v352_v25 = vmul.f32 1.442695, %v351_v24 }
 0x22d   : > { %991 = vpow2.f32 %v352_v25 }
 0x232   : > { %v524_v26 = vpop.xlane.xlu0 %523 }
 0x233   : > { %v992_v27 = vpop.eup %991  ;;  %v525_v28 = vsub.f32 %v519_v17, %v524_v26 }
 0x234   : > { %v354_v29 = vsel %vm322_vm2, %v992_v27, 0.0 }
 0x235   : > { %v526_v30 = vmul.f32 1.442695, %v525_v28  ;;  %355 = vadd.xlane.f32.xlu1 %v354_v29 }
 0x236   : > { %v434_v31 = vpop.xlane.xlu2 %433 }
 0x237   : > { %993 = vpow2.f32 %v526_v30  ;;  %v435_v32 = vsub.f32 %v429_v19, %v434_v31 }
 0x239   : > { %v436_v33 = vmul.f32 1.442695, %v435_v32 }
 0x23b   : > { %995 = vpow2.f32 %v436_v33 }
 0x23d   : > { %v1386_v34 = vpop.eup %993 }
 0x23e   : > { %v614_v35 = vpop.xlane.xlu2 %613  ;;  %v528_v36 = vsel %vm322_vm2, %v1386_v34, 0.0 }
 0x23f   : > { %v615_v37 = vsub.f32 %v609_v21, %v614_v35  ;;  %529 = vadd.xlane.f32.xlu0 %v528_v36  ;;  %v674_v36 = vld [vmem:[#allocation9 + $0x18] sm:$0xff] }
 0x240   : > { %694 = vmatpush.msra.mxu1 %v674_v36 }
 0x241   : > { %v1390_v38 = vpop.eup %995  ;;  %v616_v39 = vmul.f32 1.442695, %v615_v37  ;;  %v673_v37 = vld [vmem:[#allocation9 + $0x10] sm:$0xff] }
 0x242   : > { %v438_v40 = vsel %vm322_vm2, %v1390_v38, 0.0  ;;  %695 = vmatpush.msra.mxu1 %v673_v37 }
 0x243   : > { %997 = vpow2.f32 %v616_v39  ;;  %439 = vadd.xlane.f32.xlu2 %v438_v40  ;;  %v671_v39 = vld [vmem:[#allocation9] sm:$0xff] }
 0x245   : > { %v459_v44 = vpop.permute.xlu0 %458 }
 0x249   : > { %v1394_v41 = vpop.eup %997 }
 0x24a   : > { %v618_v42 = vsel %vm322_vm2, %v1394_v41, 0.0 }
 0x24b   : > { %619 = vadd.xlane.f32.xlu1 %v618_v42 }
 0x253   : > { %638 = vrot.lane.b32.xlu0 %v1365_v6, %s1213_s28  ;;  %s709_s28 = scalar_lea.sflag [#allocation12], %s1350_s22 }
 0x25b   : > { %373 = vrot.lane.b32.xlu2 %v1365_v6, %s1214_s29  ;;  %s1111_s29 = sshra.s32 %s738_s27, 4  ;;  %s1112_s29 = int_to_ptr.hbm [resolvable:$true] %s1111_s29 }
 0x25c   : > { %p1118_p12 = scmp.lt.s32.totalorder %s1112_s29, %s1483_s5 }
 0x264   : > { %548 = vrot.lane.b32.xlu1 %v1365_v6, %s1215_s30  ;;  %s1113_s30 = scalar_lea.hbm %s1112_s29, 32 }
 0x265   : > { %p1114_p1 = scmp.ne.s32.totalorder %s1112_s29, %s1113_s30 }
 0x267   : > { %p1115_p3 = pnand %p1114_p1, %p1319_p4 }
 0x269   : > { %p1116_p5 = pneg %p1115_p3 }
 0x2a8   : > { %v356_v43 = vpop.xlane.xlu1 %355 }
 0x2a9   : > { %999 = vrcp.f32 %v356_v43  ;;  %v368_v49 = vand.u32 2147483648, %v356_v43  ;;  %v366_v51 = vand.u32 2147483647, %v356_v43  ;;  %vm362_vm4 = vweird.f32 %v356_v43 }
 0x2ab   : > { %v369_v54 = vor.u32 1.1754944e-38, %v368_v49  ;;  %vm367_vm6 = vcmp.eq.f32.partialorder %v366_v51, 8.507059e+37 }
 0x2af   : > { %v1000_v45 = vpop.eup %999 }
 0x2b0   : > { %v358_v46 = vmul.f32 %v1000_v45, %v356_v43  ;;  %vm363_vm3 = vweird.f32 %v1000_v45 }
 0x2b1   : > { %vm364_vm5 = vmor %vm362_vm4, %vm363_vm3 }
 0x2b2   : > { %v359_v47 = vsub.f32 1.0, %v358_v46  ;;  %v530_v48 = vpop.xlane.xlu0 %529 }
 0x2b3   : > { %1001 = vrcp.f32 %v530_v48  ;;  %v540_v62 = vand.u32 2147483647, %v530_v48  ;;  %v542_v63 = vand.u32 2147483648, %v530_v48  ;;  %vm536_vm8 = vweird.f32 %v530_v48 }
 0x2b4   : > { %v360_v50 = vmul.f32 %v1000_v45, %v359_v47 }
 0x2b5   : > { %vm541_vm10 = vcmp.eq.f32.partialorder %v540_v62, 8.507059e+37  ;;  %v543_v6 = vor.u32 1.1754944e-38, %v542_v63 }
 0x2b6   : > { %v440_v52 = vpop.xlane.xlu2 %439  ;;  %v361_v53 = vadd.f32 %v1000_v45, %v360_v50 }
 0x2b7   : > { %1003 = vrcp.f32 %v440_v52  ;;  %v452_v7 = vand.u32 2147483648, %v440_v52  ;;  %v450_v9 = vand.u32 2147483647, %v440_v52  ;;  %vm446_vm12 = vweird.f32 %v440_v52 }
 0x2b8   : > { %v365_v55 = vsel %vm364_vm5, %v1000_v45, %v361_v53  ;;  %vm488_vm5 = vcmask 130112  }
 0x2b9   : > { %v1002_v56 = vpop.eup %1001  ;;  %v370_v57 = vsel %vm367_vm6, %v369_v54, %v365_v55  ;;  %v453_v15 = vor.u32 1.1754944e-38, %v452_v7  ;;  %vm451_vm14 = vcmp.eq.f32.partialorder %v450_v9, 8.507059e+37  ;;  %vm668_vm6 = vcmask 261312  }
 0x2ba   : > { %v532_v58 = vmul.f32 %v1002_v56, %v530_v48  ;;  %v371_v59 = vmul.f32 %v992_v27, %v370_v57  ;;  %vm537_vm7 = vweird.f32 %v1002_v56 }
 0x2bb   : > { %vm538_vm9 = vmor %vm536_vm8, %vm537_vm7 }
 0x2bc   : > { %v533_v60 = vsub.f32 1.0, %v532_v58  ;;  %372 = vst.msk [vmem:[%s1402_s7] sm:$0xff] %vm322_vm2, %v371_v59 }
 0x2bd   : > { %v1004_v61 = vpop.eup %1003 }
 0x2be   : > { %v534_v0 = vmul.f32 %v1002_v56, %v533_v60  ;;  %v442_v1 = vmul.f32 %v1004_v61, %v440_v52  ;;  %v374_v2 = vpop.permute.xlu2 %373  ;;  %v620_v3 = vpop.xlane.xlu1 %619  ;;  %vm447_vm11 = vweird.f32 %v1004_v61 }
 0x2bf   : > { %1005 = vrcp.f32 %v620_v3  ;;  %394 = vmatpush.msra.mxu2 %v374_v2  ;;  %vm448_vm13 = vmor %vm446_vm12, %vm447_vm11  ;;  %v632_v22 = vand.u32 2147483648, %v620_v3  ;;  %v630_v24 = vand.u32 2147483647, %v620_v3  ;;  %vm626_vm1 = vweird.f32 %v620_v3 }
 0x2c0   : > { %v535_v4 = vadd.f32 %v1002_v56, %v534_v0  ;;  %v443_v5 = vsub.f32 1.0, %v442_v1  ;;  %879 = vmatmul.msk.f32.vlgmr.msra.gmra.mxu2 %vm322_vm2, %v371_v59 }
 0x2c1   : > { %479 = vmatpush.msrb.mxu2 %v459_v44  ;;  %v633_v26 = vor.u32 1.1754944e-38, %v632_v22  ;;  %vm631_vm4 = vcmp.eq.f32.partialorder %v630_v24, 8.507059e+37 }
 0x2c2   : > { %v444_v8 = vmul.f32 %v1004_v61, %v443_v5  ;;  %v539_v10 = vsel %vm538_vm9, %v1002_v56, %v535_v4 }
 0x2c3   : > { %v544_v11 = vsel %vm541_vm10, %v543_v6, %v539_v10 }
 0x2c4   : > { %v445_v12 = vadd.f32 %v1004_v61, %v444_v8  ;;  %v545_v13 = vmul.f32 %v1386_v34, %v544_v11 }
 0x2c5   : > { %v1006_v14 = vpop.eup %1005  ;;  %v639_v16 = vpop.permute.xlu0 %638 }
 0x2c6   : > { %v622_v17 = vmul.f32 %v1006_v14, %v620_v3  ;;  %659 = vmatpush.msra.mxu2 %v639_v16  ;;  %v449_v18 = vsel %vm448_vm13, %v1004_v61, %v445_v12  ;;  %886 = vst.msk [vmem:[%s1402_s7 + $0x10] sm:$0xff] %vm322_vm2, %v545_v13  ;;  %vm627_vm15 = vweird.f32 %v1006_v14 }
 0x2c7   : > { %v454_v19 = vsel %vm451_vm14, %v453_v15, %v449_v18  ;;  %vm628_vm3 = vmor %vm626_vm1, %vm627_vm15 }
 0x2c8   : > { %v623_v20 = vsub.f32 1.0, %v622_v17  ;;  %v455_v21 = vmul.f32 %v1390_v38, %v454_v19  ;;  %v672_v38 = vld [vmem:[#allocation9 + $0x8] sm:$0xff] }
 0x2c9   : > { %696 = vmatpush.msra.mxu1 %v672_v38 }
 0x2ca   : > { %v624_v23 = vmul.f32 %v1006_v14, %v623_v20  ;;  %882 = vst.msk [vmem:[%s1402_s7 + $0x8] sm:$0xff] %vm322_vm2, %v455_v21  ;;  %883 = vmatmul.msk.f32.vlgmr.msrb.gmra.mxu2 %vm322_vm2, %v455_v21 }
 0x2cb   : > { %697 = vmatpush.msra.mxu1 %v671_v39 }
 0x2cc   : > { %v625_v25 = vadd.f32 %v1006_v14, %v624_v23 }
 0x2ce   : > { %v629_v27 = vsel %vm628_vm3, %v1006_v14, %v625_v25 }
 0x2cf   : > { %v634_v28 = vsel %vm631_vm4, %v633_v26, %v629_v27 }
 0x2d0   : > { %v635_v29 = vmul.f32 %v1394_v41, %v634_v28 }
 0x2d2   : > { %890 = vst.msk [vmem:[%s1402_s7 + $0x18] sm:$0xff] %vm322_vm2, %v635_v29  ;;  %891 = vmatmul.msk.f32.vlgmr.msra.gmra.mxu2 %vm322_vm2, %v635_v29 }
 0x2d6   : > { %v549_v30 = vpop.permute.xlu1 %548 }
 0x2d7   : > { %569 = vmatpush.msrb.mxu3 %v549_v30 }
 0x2d8   : > { %887 = vmatmul.msk.f32.vlgmr.msrb.gmra.mxu3 %vm322_vm2, %v545_v13 }
 0x343   : > { %v396_v31 = vpop.f32.mrf.mxu2 }
 0x344   : > { %399 = vst.msk [vmem:[#allocation3] sm:$0xff] %vm322_vm2, %v396_v31  ;;  %vm578_vm2 = vcmask 195712  }
 0x34d   : > { %v481_v32 = vpop.f32.mrf.mxu2 }
 0x34e   : > { %485 = vrot.lane.b32.xlu2 %v481_v32, %s1216_s13 }
 0x355   : > { %v661_v33 = vpop.f32.mrf.mxu2 }
 0x356   : > { %665 = vrot.lane.b32.xlu0 %v661_v33, %s1217_s26  ;;  %s1117_s26 = scalar_lea.hbm %s1483_s5, 64 }
 0x357   : > { %p1119_p7 = scmp.lt.s32.totalorder %s1117_s26, %s1113_s30 }
 0x359   : > { %p1120_p8 = por %p1119_p7, %p1118_p12 }
 0x35b   : > { %v571_v34 = vpop.f32.mrf.mxu3  ;;  %p1121_p9 = pnand %p1120_p8, %p1116_p5 }
 0x35c   : > { %575 = vrot.lane.b32.xlu1 %v571_v34, %s1218_s17 }
 0x3a8   : > { %v486_v35 = vpop.permute.xlu2 %485 }
 0x3a9   : > { %489 = vst.msk [vmem:[#allocation3] sm:$0xff] %vm488_vm5, %v486_v35 }
 0x3c8   : > { %v666_v41 = vpop.permute.xlu0 %665 }
 0x3ce   : > { %v576_v40 = vpop.permute.xlu1 %575 }
 0x3cf   : > { %579 = vst.msk [vmem:[#allocation3] sm:$0xff] %vm578_vm2, %v576_v40 }
 0x3d0   : > { %669 = vst.msk [vmem:[#allocation3] sm:$0xff] %vm668_vm6, %v666_v41 }
 0x3d7   : > { %v670_v42 = vld [vmem:[#allocation3] sm:$0xff] }
 0x3d8   : > { %892 = vmatmul.msk.f32.vlgmr.msra.gmra.mxu1 %vm291_vm0, %v670_v42 }
 0x3d9   : > { %1124 = shalt.err (!%p1121_p9)
}
 0x3da   : > { %s1219_s9 = smov 128   ;;  %s895_s10 = sshll.u32 %s1274_s25, 3  ;;  %v990_v43 = vld [vmem:[%s1481_s3] ss:$0 sm:$0xff] }
 0x3db   : > { %912 = dma.vmem_to_hbm [thread:$0]  (%p1319_p4), %s736_s8, 512, %s738_s27, %s709_s28, %s1219_s9, %s1219_s9, %s1216_s13  }
 0x3dc   : > { %s719_s16 = scalar_lea.hbm %s1482_s4, %s895_s10  ;;  %s1491_s30 = sshll.u32 %s1350_s22, 3 }
 0x3dd   : > { %s278_s7 = scalar_lea.vmem [#allocation10], %s1491_s30  ;;  %s723_s17 = sshll.u32 %s719_s16, 4  ;;  %s724_s17 = int_to_ptr.hbm [resolvable:$true] %s723_s17 }
 0x3de   : > { %s721_s26 = sshll.u32 %s278_s7, 4  ;;  %s704_s25 = scalar_lea.sflag [#allocation6], %s1350_s22  ;;  %s722_s26 = int_to_ptr.vmem [resolvable:$true] %s721_s26 }
 0x3df   : > { %s1139_s13 = sshra.s32 %s724_s17, 4  ;;  %s1145_s9 = scalar_lea.hbm %s1482_s4, 16  ;;  %s1140_s13 = int_to_ptr.hbm [resolvable:$true] %s1139_s13 }
 0x3e0   : > { %s1141_s8 = scalar_lea.hbm %s1140_s13, 8  ;;  %p1146_p0 = scmp.lt.s32.totalorder %s1140_s13, %s1482_s4 }
 0x3e1   : > { %p1142_p10 = scmp.ne.s32.totalorder %s1140_s13, %s1141_s8  ;;  %p1147_p2 = scmp.lt.s32.totalorder %s1145_s9, %s1141_s8 }
 0x3e3   : > { %p1143_p13 = pnand %p1142_p10, %p1319_p4  ;;  %p1148_p1 = por %p1147_p2, %p1146_p0 }
 0x3e5   : > { %p1144_p11 = pneg %p1143_p13 }
 0x3e7   : > { %p1149_p3 = pnand %p1148_p1, %p1144_p11 }
 0x455   : > { %v699_v44 = vpop.f32.mrf.mxu1 }
 0x456   : > { %v700_v45 = vadd.f32 %v990_v43, %v699_v44 }
 0x458   : > { %702 = vst.msk [vmem:[%s278_s7] sm:$0xff] %vm291_vm0, %v700_v45 }
 0x459   : > { %1152 = shalt.err (!%p1149_p3)
}
 0x45a   : > { %911 = dma.vmem_to_hbm [thread:$0]  (%p1319_p4), %s722_s26, 128, %s724_s17, %s704_s25  }
 0x45b PF: > { %s752_s22 = sand.u32 1, %s1187_s18   ;;  %p1492_p5 = scmp.ge.s32.totalorder %s1199_s21, 2 }
 0x45c   : > { %s753_s14 = scalar_lea.sflag [#allocation6], %s752_s22 }
 0x45d   : > { %p927_p12 = pnand %p1492_p5, %p1323_p6 }
 0x45f   : > { %p928_p7 = pneg %p927_p12 }
 0x461   : > { %1178 = dma.done.wait (%p928_p7), %s753_s14, 128  }
 0x462   : > { %1180 = vsyncadd (%p928_p7), %s753_s14, 4294967168  ;;  %s763_s16 = scalar_lea.sflag [#allocation12], %s752_s22 }
 0x463   : > { %1182 = dma.done.wait (%p928_p7), %s763_s16, 512  }
 0x464   : > { %1184 = vsyncadd (%p928_p7), %s763_s16, 4294966784  ;;  %p23_p4 = scmp.ge.s32.totalorder %s1293_s12, 4   ;;  %s1493_s18 = smov %s1191_s19 }
 0x465   : > { %s1494_s19 = smov %s1195_s20  ;;  %s1495_s20 = smov %s1304_s15 }
 0x466   : > { %s1496_s21 = smov %s1293_s12  ;;  %25 = sbr.rel (!%p23_p4) target bundleno = 8 (0x8), region = 109 }
 0x46b   :  { %769 = vsyncpa [#allocation5], 1 }
 0x46c   :  { %771 = vsyncpa [#allocation5 + $0x1], 1 }
 0x46d   :  { %772 = vsyncpa [#allocation8], 1 }
 0x46e   :  { %773 = vsyncpa [#allocation6], 1 }
 0x46f   :  { %775 = vsyncpa [#allocation6 + $0x1], 1 }
 0x470   :  { %776 = vsyncpa [#allocation12], 1 }
 0x471   :  { %778 = vsyncpa [#allocation12 + $0x1], 1 }

</bundles_post_ra>
